<compile_context>
chip_gen: v5e
topology: v5e:2x2
jax: 0.10.0
libtpu: 0.0.40
codegen_flags: <defaults>
</compile_context>

<pallas_src>
import jax
import jax.numpy as jnp
import numpy as np
from jax import lax
from jax.experimental import pallas as pl
from jax.experimental.pallas import tpu as pltpu


# ------------------------- fused LSTM + MLP kernel --------------------------
def make_fused_kernel(n_lstm, n_mlp, T, B, H):
    """Builds the fused kernel.

    Ref order:
      inputs : xproj0 (T*B,4H) f32   layer-0 input projection + bias, gate order (i,f,o,g)
               plen   (B,1) i32
               x_case (B,C)
               w_hh_0 (H,4H)
               [w_ih_l (H,4H), w_hh_l (H,4H), b_l (1,4H)]  for l = 1..n_lstm-1
               w0_case (C,DW), w0_h (H,DW), b0 (1,DW)
               [w, b] * (n_mlp - 1)
      outputs: out (B, n_out)
      scratch: xproj_scr (T*B, 4H)   only when n_lstm >= 2
    """

    def kernel(xproj0_ref, plen_ref, xcase_ref, *rest):
        idx = 0
        whh_refs = [rest[idx]]
        idx += 1
        wih_refs = [None]          # layer-0 input projection done in the wrapper
        b_refs = [None]
        for _ in range(1, n_lstm):
            wih_refs.append(rest[idx])
            whh_refs.append(rest[idx + 1])
            b_refs.append(rest[idx + 2])
            idx += 3
        w0c_ref, w0h_ref, b0_ref = rest[idx], rest[idx + 1], rest[idx + 2]
        idx += 3
        mlp_refs = [(rest[idx + 2 * k], rest[idx + 2 * k + 1])
                    for k in range(n_mlp - 1)]
        idx += 2 * (n_mlp - 1)
        out_ref = rest[idx]
        idx += 1
        xproj_scr = rest[idx] if n_lstm >= 2 else None

        plen = plen_ref[...]                          # (B, 1) int32
        h = jnp.zeros((B, H), jnp.float32)
        c = jnp.zeros((B, H), jnp.float32)

        for layer in range(n_lstm):
            w_hh = whh_refs[layer][...]               # resident across the T loop
            has_next = layer + 1 < n_lstm
            if has_next:
                w_ih_next = wih_refs[layer + 1][...]
                b_next = b_refs[layer + 1][...]
            # Layer 0 reads the wrapper-precomputed projection; layers >= 1
            # read what the previous layer's loop wrote into xproj_scr (the
            # same row-block is read before it is overwritten for layer+2).
            src_ref = xproj0_ref if layer == 0 else xproj_scr

            def step(t, carry):
                h, c = carry
                base = pl.multiple_of(t * B, B)
                gx = src_ref[pl.ds(base, B), :]       # (B, 4H), bias included
                gates = gx + jnp.dot(h, w_hh,
                                     preferred_element_type=jnp.float32)
                # Gate order (i, f, o, g): one sigmoid over 3H contiguous
                # lanes, one tanh over the last H lanes (2 EUP passes/step).
                sig = jax.nn.sigmoid(gates[:, 0:3 * H])
                i_g = sig[:, 0:H]
                f_g = sig[:, H:2 * H]
                o_g = sig[:, 2 * H:3 * H]
                g_g = jnp.tanh(gates[:, 3 * H:4 * H])
                c_new = f_g * c + i_g * g_g
                h_new = o_g * jnp.tanh(c_new)
                # pack_padded_sequence semantics: freeze state past each
                # sequence's length; padded positions feed zeros onward.
                valid = jnp.broadcast_to(plen > t, (B, H))   # one broadcast/step
                if has_next:
                    # Next layer's input projection for timestep t, issued
                    # here so it hides under the recurrence's MXU/EUP chain.
                    h_out = jnp.where(valid, h_new, 0.0)
                    xproj_scr[pl.ds(base, B), :] = (
                        jnp.dot(h_out, w_ih_next,
                                preferred_element_type=jnp.float32) + b_next)
                c = jnp.where(valid, c_new, c)
                h = jnp.where(valid, h_new, h)
                return (h, c)

            h, c = lax.fori_loop(0, T, step, (h, c), unroll=min(T, 8))

        # MLP head.  First dense layer consumes [x_case, h] without
        # materializing the lane concat (weight split in the wrapper).
        # TODO(synk): nn.Dropout(p=0.0) is the identity; omitted.
        act = (jnp.dot(xcase_ref[...], w0c_ref[...],
                       preferred_element_type=jnp.float32)
               + jnp.dot(h, w0h_ref[...], preferred_element_type=jnp.float32)
               + b0_ref[...])
        act = jnp.maximum(act, 0.0)
        n_rest = len(mlp_refs)
        for li, (w_ref, bias_ref) in enumerate(mlp_refs):
            act = (jnp.dot(act, w_ref[...], preferred_element_type=jnp.float32)
                   + bias_ref[...])
            if li < n_rest - 1:                        # ReLU on all but output_mean
                act = jnp.maximum(act, 0.0)
        out_ref[...] = act.astype(out_ref.dtype)

    return kernel


# ------------------------------- Full forward -------------------------------
def lstm_model_forward(params, x_case, x_process, prefix_len):
    B, I, T = x_process.shape
    C = x_case.shape[1]
    H = params["lstm"][0]["w_hh"].shape[0]
    n_lstm = len(params["lstm"])
    n_mlp = len(params["mlp"])
    n_out = params["mlp"][-1][0].shape[1]

    def reorder(w):
        # Column permutation (zero runtime cost, done once at param prep):
        # PyTorch gate order (i, f, g, o) -> kernel order (i, f, o, g).
        return jnp.concatenate(
            [w[:, :2 * H], w[:, 3 * H:4 * H], w[:, 2 * H:3 * H]], axis=1)

    # Time-major, flattened to (T*B, I): rows t*B..t*B+B-1 are timestep t.
    x_seq = jnp.transpose(x_process, (2, 0, 1)).reshape(T * B, I)
    x_seq = x_seq.astype(jnp.float32)
    plen = prefix_len.astype(jnp.int32)[:, None]       # (B, 1)

    # Layer-0 input projection (degenerate K=I MXU shape) done with plain XLA.
    lp0 = params["lstm"][0]
    xproj0 = x_seq @ reorder(lp0["w_ih"]) + reorder(lp0["b"])   # (T*B, 4H)

    # Split the first dense weight into the x_case / h parts.
    w0, b0 = params["mlp"][0]
    w0_case, w0_h = w0[:C], w0[C:]

    inputs = [xproj0, plen, x_case.astype(jnp.float32)]
    inputs.append(reorder(lp0["w_hh"]))
    for lp in params["lstm"][1:]:
        inputs += [reorder(lp["w_ih"]), reorder(lp["w_hh"]), reorder(lp["b"])]
    inputs += [w0_case, w0_h, b0]
    for w, b in params["mlp"][1:]:
        inputs += [w, b]

    kernel = make_fused_kernel(n_lstm, n_mlp, T, B, H)
    in_specs = [pl.BlockSpec(a.shape, lambda i: (0, 0)) for a in inputs]

    scratch = []
    if n_lstm >= 2:
        scratch.append(pltpu.VMEM((T * B, 4 * H), jnp.float32))

    return pl.pallas_call(
        kernel,
        out_shape=jax.ShapeDtypeStruct((B, n_out), jnp.float32),
        grid=(1,),
        in_specs=in_specs,
        out_specs=pl.BlockSpec((B, n_out), lambda i: (0, 0)),
        scratch_shapes=scratch,
        compiler_params=pltpu.CompilerParams(
            dimension_semantics=("arbitrary",)),
    )(*inputs)


# ----------------------------- pure-JAX reference ---------------------------
def _lstm_layer_ref(x_tbi, valid_tb1, w_ih, w_hh, b, h0, c0):
    H = h0.shape[-1]

    def step(carry, inp):
        h, c = carry
        x_t, m = inp
        gates = x_t @ w_ih + h @ w_hh + b[0]
        i_g = jax.nn.sigmoid(gates[:, 0:H])
        f_g = jax.nn.sigmoid(gates[:, H:2 * H])
        g_g = jnp.tanh(gates[:, 2 * H:3 * H])
        o_g = jax.nn.sigmoid(gates[:, 3 * H:4 * H])
        c_new = f_g * c + i_g * g_g
        h_new = o_g * jnp.tanh(c_new)
        c = m * c_new + (1.0 - m) * c
        h = m * h_new + (1.0 - m) * h
        return (h, c), m * h_new

    (h, c), outs = lax.scan(step, (h0, c0), (x_tbi, valid_tb1))
    return outs, h, c


def lstm_model_ref(params, x_case, x_process, prefix_len):
    B, I, T = x_process.shape
    x = jnp.transpose(x_process, (2, 0, 1))
    valid = (jnp.arange(T)[:, None] < prefix_len[None, :]
             ).astype(jnp.float32)[..., None]
    H = params["lstm"][0]["w_hh"].shape[0]
    h = jnp.zeros((B, H), jnp.float32)
    c = jnp.zeros((B, H), jnp.float32)
    outs = x
    for lp in params["lstm"]:
        outs, h, c = _lstm_layer_ref(outs, valid, lp["w_ih"], lp["w_hh"],
                                     lp["b"], h, c)
    hcat = jnp.concatenate([x_case, h], axis=1)
    n = len(params["mlp"])
    for li, (w, b) in enumerate(params["mlp"]):
        hcat = hcat @ w + b
        if li < n - 1:
            hcat = jnp.maximum(hcat, 0.0)
    return hcat


# ------------------------------- params init --------------------------------
def init_params(key, C, I, H, n_lstm, n_dense, dense_width, n_out):
    keys = iter(jax.random.split(key, 64))
    lstm_params = []
    in_dim = I
    for _ in range(n_lstm):
        lstm_params.append(dict(
            w_ih=0.1 * jax.random.normal(next(keys), (in_dim, 4 * H), jnp.float32),
            w_hh=0.1 * jax.random.normal(next(keys), (H, 4 * H), jnp.float32),
            b=0.1 * jax.random.normal(next(keys), (1, 4 * H), jnp.float32),
        ))
        in_dim = H
    sizes = []
    d_in = C + H
    for _ in range(n_dense):                # dense_layers
        sizes.append((d_in, dense_width))
        d_in = dense_width
    sizes.append((d_in, 10))                # last_layer
    sizes.append((10, n_out))               # output_mean
    mlp_params = []
    for din, dout in sizes:
        mlp_params.append((
            0.1 * jax.random.normal(next(keys), (din, dout), jnp.float32),
            0.1 * jax.random.normal(next(keys), (1, dout), jnp.float32),
        ))
    return {"lstm": lstm_params, "mlp": mlp_params}


if __name__ == "__main__":
    B, C, I, T = 8, 4, 4, 8          # batch, case-features, process-features, seq
    H, N_LSTM = 32, 2                # lstm_size, nr_lstm_layers
    N_DENSE, DW, N_OUT = 2, 32, 1    # nr_dense_layers, dense_width, nr_outputs

    key = jax.random.PRNGKey(0)
    kp, k1, k2 = jax.random.split(key, 3)
    params = init_params(kp, C, I, H, N_LSTM, N_DENSE, DW, N_OUT)

    x_case = jax.random.normal(k1, (B, C), jnp.float32)
    x_process = jax.random.normal(k2, (B, I, T), jnp.float32)
    prefix_len = jnp.array([8, 5, 3, 8, 1, 6, 7, 2], dtype=jnp.int32)

    fwd = jax.jit(lstm_model_forward)
    out = jax.block_until_ready(fwd(params, x_case, x_process, prefix_len))

    ref = jax.block_until_ready(lstm_model_ref(params, x_case, x_process, prefix_len))
    assert out.shape == (B, N_OUT)
    np.testing.assert_allclose(np.asarray(out), np.asarray(ref),
                               rtol=1e-3, atol=1e-3)
    print("KERNEL_OK")
</pallas_src>

<mosaic_0001>
module attributes {stable_mosaic.version = 11 : i64} {
  func.func @kernel(%arg0: i32, %arg1: memref<64x128xf32, #tpu.memory_space<vmem>>, %arg2: memref<8x1xi32, #tpu.memory_space<vmem>>, %arg3: memref<8x4xf32, #tpu.memory_space<vmem>>, %arg4: memref<32x128xf32, #tpu.memory_space<vmem>>, %arg5: memref<32x128xf32, #tpu.memory_space<vmem>>, %arg6: memref<32x128xf32, #tpu.memory_space<vmem>>, %arg7: memref<1x128xf32, #tpu.memory_space<vmem>>, %arg8: memref<4x32xf32, #tpu.memory_space<vmem>>, %arg9: memref<32x32xf32, #tpu.memory_space<vmem>>, %arg10: memref<1x32xf32, #tpu.memory_space<vmem>>, %arg11: memref<32x32xf32, #tpu.memory_space<vmem>>, %arg12: memref<1x32xf32, #tpu.memory_space<vmem>>, %arg13: memref<32x10xf32, #tpu.memory_space<vmem>>, %arg14: memref<1x10xf32, #tpu.memory_space<vmem>>, %arg15: memref<10x1xf32, #tpu.memory_space<vmem>>, %arg16: memref<1x1xf32, #tpu.memory_space<vmem>>, %arg17: memref<8x1xf32, #tpu.memory_space<vmem>>, %arg18: memref<64x128xf32, #tpu.memory_space<vmem>>) attributes {dimension_semantics = [#tpu.dimension_semantics<arbitrary>], iteration_bounds = array<i64: 1>, scalar_prefetch = 0 : i64, scratch_operands = 1 : i64, tpu.core_type = #tpu.core_type<tc>, window_params = [{pipeline_mode = #tpu.pipeline_mode<synchronous>, transform_indices = @transform_0, window_bounds = array<i64: 64, 128>}, {pipeline_mode = #tpu.pipeline_mode<synchronous>, transform_indices = @transform_1, window_bounds = array<i64: 8, 1>}, {pipeline_mode = #tpu.pipeline_mode<synchronous>, transform_indices = @transform_2, window_bounds = array<i64: 8, 4>}, {pipeline_mode = #tpu.pipeline_mode<synchronous>, transform_indices = @transform_3, window_bounds = array<i64: 32, 128>}, {pipeline_mode = #tpu.pipeline_mode<synchronous>, transform_indices = @transform_4, window_bounds = array<i64: 32, 128>}, {pipeline_mode = #tpu.pipeline_mode<synchronous>, transform_indices = @transform_5, window_bounds = array<i64: 32, 128>}, {pipeline_mode = #tpu.pipeline_mode<synchronous>, transform_indices = @transform_6, window_bounds = array<i64: 1, 128>}, {pipeline_mode = #tpu.pipeline_mode<synchronous>, transform_indices = @transform_7, window_bounds = array<i64: 4, 32>}, {pipeline_mode = #tpu.pipeline_mode<synchronous>, transform_indices = @transform_8, window_bounds = array<i64: 32, 32>}, {pipeline_mode = #tpu.pipeline_mode<synchronous>, transform_indices = @transform_9, window_bounds = array<i64: 1, 32>}, {pipeline_mode = #tpu.pipeline_mode<synchronous>, transform_indices = @transform_10, window_bounds = array<i64: 32, 32>}, {pipeline_mode = #tpu.pipeline_mode<synchronous>, transform_indices = @transform_11, window_bounds = array<i64: 1, 32>}, {pipeline_mode = #tpu.pipeline_mode<synchronous>, transform_indices = @transform_12, window_bounds = array<i64: 32, 10>}, {pipeline_mode = #tpu.pipeline_mode<synchronous>, transform_indices = @transform_13, window_bounds = array<i64: 1, 10>}, {pipeline_mode = #tpu.pipeline_mode<synchronous>, transform_indices = @transform_14, window_bounds = array<i64: 10, 1>}, {pipeline_mode = #tpu.pipeline_mode<synchronous>, transform_indices = @transform_15, window_bounds = array<i64: 1, 1>}, {pipeline_mode = #tpu.pipeline_mode<synchronous>, transform_indices = @transform_16, window_bounds = array<i64: 8, 1>}]} {
    %c0 = arith.constant 0 : index
    %c0_0 = arith.constant 0 : index
    %0 = vector.load %arg2[%c0, %c0_0] : memref<8x1xi32, #tpu.memory_space<vmem>>, vector<8x1xi32>
    %cst = arith.constant 0.000000e+00 : f32
    %1 = vector.broadcast %cst : f32 to vector<8x32xf32>
    %cst_1 = arith.constant 0.000000e+00 : f32
    %2 = vector.broadcast %cst_1 : f32 to vector<8x32xf32>
    %c0_2 = arith.constant 0 : index
    %c0_3 = arith.constant 0 : index
    %3 = vector.load %arg4[%c0_2, %c0_3] : memref<32x128xf32, #tpu.memory_space<vmem>>, vector<32x128xf32>
    %c0_4 = arith.constant 0 : index
    %c0_5 = arith.constant 0 : index
    %4 = vector.load %arg5[%c0_4, %c0_5] : memref<32x128xf32, #tpu.memory_space<vmem>>, vector<32x128xf32>
    %c0_6 = arith.constant 0 : index
    %c0_7 = arith.constant 0 : index
    %5 = vector.load %arg7[%c0_6, %c0_7] : memref<1x128xf32, #tpu.memory_space<vmem>>, vector<1x128xf32>
    %c0_i32 = arith.constant 0 : i32
    %c8_i32 = arith.constant 8 : i32
    %6 = arith.muli %c0_i32, %c8_i32 : i32
    %7 = tpu.assume_multiple %6, 8 : i32
    %8 = arith.index_cast %7 : i32 to index
    %c0_8 = arith.constant 0 : index
    %9 = vector.load %arg1[%8, %c0_8] : memref<64x128xf32, #tpu.memory_space<vmem>>, vector<8x128xf32>
    %cst_9 = arith.constant dense<0.000000e+00> : vector<8x128xf32>
    %10 = tpu.matmul %1, %3, %cst_9 {dimension_numbers = #tpu.dot_dimension_numbers<[1], [0], [0], [1], [0, 0, 1, 1], [], []>} : vector<8x32xf32>, vector<32x128xf32>, vector<8x128xf32> -> vector<8x128xf32>
    %11 = arith.addf %9, %10 : vector<8x128xf32>
    %12 = vector.extract_strided_slice %11 {offsets = [0, 0], sizes = [8, 96], strides = [1, 1]} : vector<8x128xf32> to vector<8x96xf32>
    %13 = arith.negf %12 : vector<8x96xf32>
    %14 = math.exp %13 : vector<8x96xf32>
    %cst_10 = arith.constant 1.000000e+00 : f32
    %15 = vector.broadcast %cst_10 : f32 to vector<8x96xf32>
    %16 = arith.addf %15, %14 : vector<8x96xf32>
    %17 = arith.divf %15, %16 : vector<8x96xf32>
    %18 = vector.extract_strided_slice %17 {offsets = [0, 0], sizes = [8, 32], strides = [1, 1]} : vector<8x96xf32> to vector<8x32xf32>
    %19 = vector.extract_strided_slice %17 {offsets = [0, 32], sizes = [8, 32], strides = [1, 1]} : vector<8x96xf32> to vector<8x32xf32>
    %20 = vector.extract_strided_slice %17 {offsets = [0, 64], sizes = [8, 32], strides = [1, 1]} : vector<8x96xf32> to vector<8x32xf32>
    %21 = vector.extract_strided_slice %11 {offsets = [0, 96], sizes = [8, 32], strides = [1, 1]} : vector<8x128xf32> to vector<8x32xf32>
    %22 = math.tanh %21 : vector<8x32xf32>
    %23 = arith.mulf %19, %2 : vector<8x32xf32>
    %24 = arith.mulf %18, %22 : vector<8x32xf32>
    %25 = arith.addf %23, %24 : vector<8x32xf32>
    %26 = math.tanh %25 : vector<8x32xf32>
    %27 = arith.mulf %20, %26 : vector<8x32xf32>
    %28 = vector.broadcast %c0_i32 : i32 to vector<8x1xi32>
    %29 = arith.cmpi sgt, %0, %28 : vector<8x1xi32>
    %30 = vector.shape_cast %29 : vector<8x1xi1> to vector<8x1xi1>
    %31 = vector.broadcast %30 : vector<8x1xi1> to vector<8x32xi1>
    %cst_11 = arith.constant 0.000000e+00 : f32
    %32 = vector.broadcast %cst_11 : f32 to vector<8x32xf32>
    %33 = arith.select %31, %27, %32 : vector<8x32xi1>, vector<8x32xf32>
    %cst_12 = arith.constant dense<0.000000e+00> : vector<8x128xf32>
    %34 = tpu.matmul %33, %4, %cst_12 {dimension_numbers = #tpu.dot_dimension_numbers<[1], [0], [0], [1], [0, 0, 1, 1], [], []>} : vector<8x32xf32>, vector<32x128xf32>, vector<8x128xf32> -> vector<8x128xf32>
    %35 = vector.broadcast %5 : vector<1x128xf32> to vector<8x128xf32>
    %36 = arith.addf %34, %35 : vector<8x128xf32>
    %37 = arith.index_cast %7 : i32 to index
    %c0_13 = arith.constant 0 : index
    %38 = vector.load %arg18[%37, %c0_13] : memref<64x128xf32, #tpu.memory_space<vmem>>, vector<8x128xf32>
    tpu.vector_store %arg18[%37, %c0_13], %36 {strides = array<i32>} : memref<64x128xf32, #tpu.memory_space<vmem>>, vector<8x128xf32>,
    %39 = arith.select %31, %25, %2 : vector<8x32xi1>, vector<8x32xf32>
    %40 = arith.select %31, %27, %1 : vector<8x32xi1>, vector<8x32xf32>
    %c1_i32 = arith.constant 1 : i32
    %c8_i32_14 = arith.constant 8 : i32
    %41 = arith.muli %c1_i32, %c8_i32_14 : i32
    %42 = tpu.assume_multiple %41, 8 : i32
    %43 = arith.index_cast %42 : i32 to index
    %c0_15 = arith.constant 0 : index
    %44 = vector.load %arg1[%43, %c0_15] : memref<64x128xf32, #tpu.memory_space<vmem>>, vector<8x128xf32>
    %cst_16 = arith.constant dense<0.000000e+00> : vector<8x128xf32>
    %45 = tpu.matmul %40, %3, %cst_16 {dimension_numbers = #tpu.dot_dimension_numbers<[1], [0], [0], [1], [0, 0, 1, 1], [], []>} : vector<8x32xf32>, vector<32x128xf32>, vector<8x128xf32> -> vector<8x128xf32>
    %46 = arith.addf %44, %45 : vector<8x128xf32>
    %47 = vector.extract_strided_slice %46 {offsets = [0, 0], sizes = [8, 96], strides = [1, 1]} : vector<8x128xf32> to vector<8x96xf32>
    %48 = arith.negf %47 : vector<8x96xf32>
    %49 = math.exp %48 : vector<8x96xf32>
    %cst_17 = arith.constant 1.000000e+00 : f32
    %50 = vector.broadcast %cst_17 : f32 to vector<8x96xf32>
    %51 = arith.addf %50, %49 : vector<8x96xf32>
    %52 = arith.divf %50, %51 : vector<8x96xf32>
    %53 = vector.extract_strided_slice %52 {offsets = [0, 0], sizes = [8, 32], strides = [1, 1]} : vector<8x96xf32> to vector<8x32xf32>
    %54 = vector.extract_strided_slice %52 {offsets = [0, 32], sizes = [8, 32], strides = [1, 1]} : vector<8x96xf32> to vector<8x32xf32>
    %55 = vector.extract_strided_slice %52 {offsets = [0, 64], sizes = [8, 32], strides = [1, 1]} : vector<8x96xf32> to vector<8x32xf32>
    %56 = vector.extract_strided_slice %46 {offsets = [0, 96], sizes = [8, 32], strides = [1, 1]} : vector<8x128xf32> to vector<8x32xf32>
    %57 = math.tanh %56 : vector<8x32xf32>
    %58 = arith.mulf %54, %39 : vector<8x32xf32>
    %59 = arith.mulf %53, %57 : vector<8x32xf32>
    %60 = arith.addf %58, %59 : vector<8x32xf32>
    %61 = math.tanh %60 : vector<8x32xf32>
    %62 = arith.mulf %55, %61 : vector<8x32xf32>
    %63 = vector.broadcast %c1_i32 : i32 to vector<8x1xi32>
    %64 = arith.cmpi sgt, %0, %63 : vector<8x1xi32>
    %65 = vector.shape_cast %64 : vector<8x1xi1> to vector<8x1xi1>
    %66 = vector.broadcast %65 : vector<8x1xi1> to vector<8x32xi1>
    %cst_18 = arith.constant 0.000000e+00 : f32
    %67 = vector.broadcast %cst_18 : f32 to vector<8x32xf32>
    %68 = arith.select %66, %62, %67 : vector<8x32xi1>, vector<8x32xf32>
    %cst_19 = arith.constant dense<0.000000e+00> : vector<8x128xf32>
    %69 = tpu.matmul %68, %4, %cst_19 {dimension_numbers = #tpu.dot_dimension_numbers<[1], [0], [0], [1], [0, 0, 1, 1], [], []>} : vector<8x32xf32>, vector<32x128xf32>, vector<8x128xf32> -> vector<8x128xf32>
    %70 = vector.broadcast %5 : vector<1x128xf32> to vector<8x128xf32>
    %71 = arith.addf %69, %70 : vector<8x128xf32>
    %72 = arith.index_cast %42 : i32 to index
    %c0_20 = arith.constant 0 : index
    %73 = vector.load %arg18[%72, %c0_20] : memref<64x128xf32, #tpu.memory_space<vmem>>, vector<8x128xf32>
    tpu.vector_store %arg18[%72, %c0_20], %71 {strides = array<i32>} : memref<64x128xf32, #tpu.memory_space<vmem>>, vector<8x128xf32>,
    %74 = arith.select %66, %60, %39 : vector<8x32xi1>, vector<8x32xf32>
    %75 = arith.select %66, %62, %40 : vector<8x32xi1>, vector<8x32xf32>
    %c2_i32 = arith.constant 2 : i32
    %c8_i32_21 = arith.constant 8 : i32
    %76 = arith.muli %c2_i32, %c8_i32_21 : i32
    %77 = tpu.assume_multiple %76, 8 : i32
    %78 = arith.index_cast %77 : i32 to index
    %c0_22 = arith.constant 0 : index
    %79 = vector.load %arg1[%78, %c0_22] : memref<64x128xf32, #tpu.memory_space<vmem>>, vector<8x128xf32>
    %cst_23 = arith.constant dense<0.000000e+00> : vector<8x128xf32>
    %80 = tpu.matmul %75, %3, %cst_23 {dimension_numbers = #tpu.dot_dimension_numbers<[1], [0], [0], [1], [0, 0, 1, 1], [], []>} : vector<8x32xf32>, vector<32x128xf32>, vector<8x128xf32> -> vector<8x128xf32>
    %81 = arith.addf %79, %80 : vector<8x128xf32>
    %82 = vector.extract_strided_slice %81 {offsets = [0, 0], sizes = [8, 96], strides = [1, 1]} : vector<8x128xf32> to vector<8x96xf32>
    %83 = arith.negf %82 : vector<8x96xf32>
    %84 = math.exp %83 : vector<8x96xf32>
    %cst_24 = arith.constant 1.000000e+00 : f32
    %85 = vector.broadcast %cst_24 : f32 to vector<8x96xf32>
    %86 = arith.addf %85, %84 : vector<8x96xf32>
    %87 = arith.divf %85, %86 : vector<8x96xf32>
    %88 = vector.extract_strided_slice %87 {offsets = [0, 0], sizes = [8, 32], strides = [1, 1]} : vector<8x96xf32> to vector<8x32xf32>
    %89 = vector.extract_strided_slice %87 {offsets = [0, 32], sizes = [8, 32], strides = [1, 1]} : vector<8x96xf32> to vector<8x32xf32>
    %90 = vector.extract_strided_slice %87 {offsets = [0, 64], sizes = [8, 32], strides = [1, 1]} : vector<8x96xf32> to vector<8x32xf32>
    %91 = vector.extract_strided_slice %81 {offsets = [0, 96], sizes = [8, 32], strides = [1, 1]} : vector<8x128xf32> to vector<8x32xf32>
    %92 = math.tanh %91 : vector<8x32xf32>
    %93 = arith.mulf %89, %74 : vector<8x32xf32>
    %94 = arith.mulf %88, %92 : vector<8x32xf32>
    %95 = arith.addf %93, %94 : vector<8x32xf32>
    %96 = math.tanh %95 : vector<8x32xf32>
    %97 = arith.mulf %90, %96 : vector<8x32xf32>
    %98 = vector.broadcast %c2_i32 : i32 to vector<8x1xi32>
    %99 = arith.cmpi sgt, %0, %98 : vector<8x1xi32>
    %100 = vector.shape_cast %99 : vector<8x1xi1> to vector<8x1xi1>
    %101 = vector.broadcast %100 : vector<8x1xi1> to vector<8x32xi1>
    %cst_25 = arith.constant 0.000000e+00 : f32
    %102 = vector.broadcast %cst_25 : f32 to vector<8x32xf32>
    %103 = arith.select %101, %97, %102 : vector<8x32xi1>, vector<8x32xf32>
    %cst_26 = arith.constant dense<0.000000e+00> : vector<8x128xf32>
    %104 = tpu.matmul %103, %4, %cst_26 {dimension_numbers = #tpu.dot_dimension_numbers<[1], [0], [0], [1], [0, 0, 1, 1], [], []>} : vector<8x32xf32>, vector<32x128xf32>, vector<8x128xf32> -> vector<8x128xf32>
    %105 = vector.broadcast %5 : vector<1x128xf32> to vector<8x128xf32>
    %106 = arith.addf %104, %105 : vector<8x128xf32>
    %107 = arith.index_cast %77 : i32 to index
    %c0_27 = arith.constant 0 : index
    %108 = vector.load %arg18[%107, %c0_27] : memref<64x128xf32, #tpu.memory_space<vmem>>, vector<8x128xf32>
    tpu.vector_store %arg18[%107, %c0_27], %106 {strides = array<i32>} : memref<64x128xf32, #tpu.memory_space<vmem>>, vector<8x128xf32>,
    %109 = arith.select %101, %95, %74 : vector<8x32xi1>, vector<8x32xf32>
    %110 = arith.select %101, %97, %75 : vector<8x32xi1>, vector<8x32xf32>
    %c3_i32 = arith.constant 3 : i32
    %c8_i32_28 = arith.constant 8 : i32
    %111 = arith.muli %c3_i32, %c8_i32_28 : i32
    %112 = tpu.assume_multiple %111, 8 : i32
    %113 = arith.index_cast %112 : i32 to index
    %c0_29 = arith.constant 0 : index
    %114 = vector.load %arg1[%113, %c0_29] : memref<64x128xf32, #tpu.memory_space<vmem>>, vector<8x128xf32>
    %cst_30 = arith.constant dense<0.000000e+00> : vector<8x128xf32>
    %115 = tpu.matmul %110, %3, %cst_30 {dimension_numbers = #tpu.dot_dimension_numbers<[1], [0], [0], [1], [0, 0, 1, 1], [], []>} : vector<8x32xf32>, vector<32x128xf32>, vector<8x128xf32> -> vector<8x128xf32>
    %116 = arith.addf %114, %115 : vector<8x128xf32>
    %117 = vector.extract_strided_slice %116 {offsets = [0, 0], sizes = [8, 96], strides = [1, 1]} : vector<8x128xf32> to vector<8x96xf32>
    %118 = arith.negf %117 : vector<8x96xf32>
    %119 = math.exp %118 : vector<8x96xf32>
    %cst_31 = arith.constant 1.000000e+00 : f32
    %120 = vector.broadcast %cst_31 : f32 to vector<8x96xf32>
    %121 = arith.addf %120, %119 : vector<8x96xf32>
    %122 = arith.divf %120, %121 : vector<8x96xf32>
    %123 = vector.extract_strided_slice %122 {offsets = [0, 0], sizes = [8, 32], strides = [1, 1]} : vector<8x96xf32> to vector<8x32xf32>
    %124 = vector.extract_strided_slice %122 {offsets = [0, 32], sizes = [8, 32], strides = [1, 1]} : vector<8x96xf32> to vector<8x32xf32>
    %125 = vector.extract_strided_slice %122 {offsets = [0, 64], sizes = [8, 32], strides = [1, 1]} : vector<8x96xf32> to vector<8x32xf32>
    %126 = vector.extract_strided_slice %116 {offsets = [0, 96], sizes = [8, 32], strides = [1, 1]} : vector<8x128xf32> to vector<8x32xf32>
    %127 = math.tanh %126 : vector<8x32xf32>
    %128 = arith.mulf %124, %109 : vector<8x32xf32>
    %129 = arith.mulf %123, %127 : vector<8x32xf32>
    %130 = arith.addf %128, %129 : vector<8x32xf32>
    %131 = math.tanh %130 : vector<8x32xf32>
    %132 = arith.mulf %125, %131 : vector<8x32xf32>
    %133 = vector.broadcast %c3_i32 : i32 to vector<8x1xi32>
    %134 = arith.cmpi sgt, %0, %133 : vector<8x1xi32>
    %135 = vector.shape_cast %134 : vector<8x1xi1> to vector<8x1xi1>
    %136 = vector.broadcast %135 : vector<8x1xi1> to vector<8x32xi1>
    %cst_32 = arith.constant 0.000000e+00 : f32
    %137 = vector.broadcast %cst_32 : f32 to vector<8x32xf32>
    %138 = arith.select %136, %132, %137 : vector<8x32xi1>, vector<8x32xf32>
    %cst_33 = arith.constant dense<0.000000e+00> : vector<8x128xf32>
    %139 = tpu.matmul %138, %4, %cst_33 {dimension_numbers = #tpu.dot_dimension_numbers<[1], [0], [0], [1], [0, 0, 1, 1], [], []>} : vector<8x32xf32>, vector<32x128xf32>, vector<8x128xf32> -> vector<8x128xf32>
    %140 = vector.broadcast %5 : vector<1x128xf32> to vector<8x128xf32>
    %141 = arith.addf %139, %140 : vector<8x128xf32>
    %142 = arith.index_cast %112 : i32 to index
    %c0_34 = arith.constant 0 : index
    %143 = vector.load %arg18[%142, %c0_34] : memref<64x128xf32, #tpu.memory_space<vmem>>, vector<8x128xf32>
    tpu.vector_store %arg18[%142, %c0_34], %141 {strides = array<i32>} : memref<64x128xf32, #tpu.memory_space<vmem>>, vector<8x128xf32>,
    %144 = arith.select %136, %130, %109 : vector<8x32xi1>, vector<8x32xf32>
    %145 = arith.select %136, %132, %110 : vector<8x32xi1>, vector<8x32xf32>
    %c4_i32 = arith.constant 4 : i32
    %c8_i32_35 = arith.constant 8 : i32
    %146 = arith.muli %c4_i32, %c8_i32_35 : i32
    %147 = tpu.assume_multiple %146, 8 : i32
    %148 = arith.index_cast %147 : i32 to index
    %c0_36 = arith.constant 0 : index
    %149 = vector.load %arg1[%148, %c0_36] : memref<64x128xf32, #tpu.memory_space<vmem>>, vector<8x128xf32>
    %cst_37 = arith.constant dense<0.000000e+00> : vector<8x128xf32>
    %150 = tpu.matmul %145, %3, %cst_37 {dimension_numbers = #tpu.dot_dimension_numbers<[1], [0], [0], [1], [0, 0, 1, 1], [], []>} : vector<8x32xf32>, vector<32x128xf32>, vector<8x128xf32> -> vector<8x128xf32>
    %151 = arith.addf %149, %150 : vector<8x128xf32>
    %152 = vector.extract_strided_slice %151 {offsets = [0, 0], sizes = [8, 96], strides = [1, 1]} : vector<8x128xf32> to vector<8x96xf32>
    %153 = arith.negf %152 : vector<8x96xf32>
    %154 = math.exp %153 : vector<8x96xf32>
    %cst_38 = arith.constant 1.000000e+00 : f32
    %155 = vector.broadcast %cst_38 : f32 to vector<8x96xf32>
    %156 = arith.addf %155, %154 : vector<8x96xf32>
    %157 = arith.divf %155, %156 : vector<8x96xf32>
    %158 = vector.extract_strided_slice %157 {offsets = [0, 0], sizes = [8, 32], strides = [1, 1]} : vector<8x96xf32> to vector<8x32xf32>
    %159 = vector.extract_strided_slice %157 {offsets = [0, 32], sizes = [8, 32], strides = [1, 1]} : vector<8x96xf32> to vector<8x32xf32>
    %160 = vector.extract_strided_slice %157 {offsets = [0, 64], sizes = [8, 32], strides = [1, 1]} : vector<8x96xf32> to vector<8x32xf32>
    %161 = vector.extract_strided_slice %151 {offsets = [0, 96], sizes = [8, 32], strides = [1, 1]} : vector<8x128xf32> to vector<8x32xf32>
    %162 = math.tanh %161 : vector<8x32xf32>
    %163 = arith.mulf %159, %144 : vector<8x32xf32>
    %164 = arith.mulf %158, %162 : vector<8x32xf32>
    %165 = arith.addf %163, %164 : vector<8x32xf32>
    %166 = math.tanh %165 : vector<8x32xf32>
    %167 = arith.mulf %160, %166 : vector<8x32xf32>
    %168 = vector.broadcast %c4_i32 : i32 to vector<8x1xi32>
    %169 = arith.cmpi sgt, %0, %168 : vector<8x1xi32>
    %170 = vector.shape_cast %169 : vector<8x1xi1> to vector<8x1xi1>
    %171 = vector.broadcast %170 : vector<8x1xi1> to vector<8x32xi1>
    %cst_39 = arith.constant 0.000000e+00 : f32
    %172 = vector.broadcast %cst_39 : f32 to vector<8x32xf32>
    %173 = arith.select %171, %167, %172 : vector<8x32xi1>, vector<8x32xf32>
    %cst_40 = arith.constant dense<0.000000e+00> : vector<8x128xf32>
    %174 = tpu.matmul %173, %4, %cst_40 {dimension_numbers = #tpu.dot_dimension_numbers<[1], [0], [0], [1], [0, 0, 1, 1], [], []>} : vector<8x32xf32>, vector<32x128xf32>, vector<8x128xf32> -> vector<8x128xf32>
    %175 = vector.broadcast %5 : vector<1x128xf32> to vector<8x128xf32>
    %176 = arith.addf %174, %175 : vector<8x128xf32>
    %177 = arith.index_cast %147 : i32 to index
    %c0_41 = arith.constant 0 : index
    %178 = vector.load %arg18[%177, %c0_41] : memref<64x128xf32, #tpu.memory_space<vmem>>, vector<8x128xf32>
    tpu.vector_store %arg18[%177, %c0_41], %176 {strides = array<i32>} : memref<64x128xf32, #tpu.memory_space<vmem>>, vector<8x128xf32>,
    %179 = arith.select %171, %165, %144 : vector<8x32xi1>, vector<8x32xf32>
    %180 = arith.select %171, %167, %145 : vector<8x32xi1>, vector<8x32xf32>
    %c5_i32 = arith.constant 5 : i32
    %c8_i32_42 = arith.constant 8 : i32
    %181 = arith.muli %c5_i32, %c8_i32_42 : i32
    %182 = tpu.assume_multiple %181, 8 : i32
    %183 = arith.index_cast %182 : i32 to index
    %c0_43 = arith.constant 0 : index
    %184 = vector.load %arg1[%183, %c0_43] : memref<64x128xf32, #tpu.memory_space<vmem>>, vector<8x128xf32>
    %cst_44 = arith.constant dense<0.000000e+00> : vector<8x128xf32>
    %185 = tpu.matmul %180, %3, %cst_44 {dimension_numbers = #tpu.dot_dimension_numbers<[1], [0], [0], [1], [0, 0, 1, 1], [], []>} : vector<8x32xf32>, vector<32x128xf32>, vector<8x128xf32> -> vector<8x128xf32>
    %186 = arith.addf %184, %185 : vector<8x128xf32>
    %187 = vector.extract_strided_slice %186 {offsets = [0, 0], sizes = [8, 96], strides = [1, 1]} : vector<8x128xf32> to vector<8x96xf32>
    %188 = arith.negf %187 : vector<8x96xf32>
    %189 = math.exp %188 : vector<8x96xf32>
    %cst_45 = arith.constant 1.000000e+00 : f32
    %190 = vector.broadcast %cst_45 : f32 to vector<8x96xf32>
    %191 = arith.addf %190, %189 : vector<8x96xf32>
    %192 = arith.divf %190, %191 : vector<8x96xf32>
    %193 = vector.extract_strided_slice %192 {offsets = [0, 0], sizes = [8, 32], strides = [1, 1]} : vector<8x96xf32> to vector<8x32xf32>
    %194 = vector.extract_strided_slice %192 {offsets = [0, 32], sizes = [8, 32], strides = [1, 1]} : vector<8x96xf32> to vector<8x32xf32>
    %195 = vector.extract_strided_slice %192 {offsets = [0, 64], sizes = [8, 32], strides = [1, 1]} : vector<8x96xf32> to vector<8x32xf32>
    %196 = vector.extract_strided_slice %186 {offsets = [0, 96], sizes = [8, 32], strides = [1, 1]} : vector<8x128xf32> to vector<8x32xf32>
    %197 = math.tanh %196 : vector<8x32xf32>
    %198 = arith.mulf %194, %179 : vector<8x32xf32>
    %199 = arith.mulf %193, %197 : vector<8x32xf32>
    %200 = arith.addf %198, %199 : vector<8x32xf32>
    %201 = math.tanh %200 : vector<8x32xf32>
    %202 = arith.mulf %195, %201 : vector<8x32xf32>
    %203 = vector.broadcast %c5_i32 : i32 to vector<8x1xi32>
    %204 = arith.cmpi sgt, %0, %203 : vector<8x1xi32>
    %205 = vector.shape_cast %204 : vector<8x1xi1> to vector<8x1xi1>
    %206 = vector.broadcast %205 : vector<8x1xi1> to vector<8x32xi1>
    %cst_46 = arith.constant 0.000000e+00 : f32
    %207 = vector.broadcast %cst_46 : f32 to vector<8x32xf32>
    %208 = arith.select %206, %202, %207 : vector<8x32xi1>, vector<8x32xf32>
    %cst_47 = arith.constant dense<0.000000e+00> : vector<8x128xf32>
    %209 = tpu.matmul %208, %4, %cst_47 {dimension_numbers = #tpu.dot_dimension_numbers<[1], [0], [0], [1], [0, 0, 1, 1], [], []>} : vector<8x32xf32>, vector<32x128xf32>, vector<8x128xf32> -> vector<8x128xf32>
    %210 = vector.broadcast %5 : vector<1x128xf32> to vector<8x128xf32>
    %211 = arith.addf %209, %210 : vector<8x128xf32>
    %212 = arith.index_cast %182 : i32 to index
    %c0_48 = arith.constant 0 : index
    %213 = vector.load %arg18[%212, %c0_48] : memref<64x128xf32, #tpu.memory_space<vmem>>, vector<8x128xf32>
    tpu.vector_store %arg18[%212, %c0_48], %211 {strides = array<i32>} : memref<64x128xf32, #tpu.memory_space<vmem>>, vector<8x128xf32>,
    %214 = arith.select %206, %200, %179 : vector<8x32xi1>, vector<8x32xf32>
    %215 = arith.select %206, %202, %180 : vector<8x32xi1>, vector<8x32xf32>
    %c6_i32 = arith.constant 6 : i32
    %c8_i32_49 = arith.constant 8 : i32
    %216 = arith.muli %c6_i32, %c8_i32_49 : i32
    %217 = tpu.assume_multiple %216, 8 : i32
    %218 = arith.index_cast %217 : i32 to index
    %c0_50 = arith.constant 0 : index
    %219 = vector.load %arg1[%218, %c0_50] : memref<64x128xf32, #tpu.memory_space<vmem>>, vector<8x128xf32>
    %cst_51 = arith.constant dense<0.000000e+00> : vector<8x128xf32>
    %220 = tpu.matmul %215, %3, %cst_51 {dimension_numbers = #tpu.dot_dimension_numbers<[1], [0], [0], [1], [0, 0, 1, 1], [], []>} : vector<8x32xf32>, vector<32x128xf32>, vector<8x128xf32> -> vector<8x128xf32>
    %221 = arith.addf %219, %220 : vector<8x128xf32>
    %222 = vector.extract_strided_slice %221 {offsets = [0, 0], sizes = [8, 96], strides = [1, 1]} : vector<8x128xf32> to vector<8x96xf32>
    %223 = arith.negf %222 : vector<8x96xf32>
    %224 = math.exp %223 : vector<8x96xf32>
    %cst_52 = arith.constant 1.000000e+00 : f32
    %225 = vector.broadcast %cst_52 : f32 to vector<8x96xf32>
    %226 = arith.addf %225, %224 : vector<8x96xf32>
    %227 = arith.divf %225, %226 : vector<8x96xf32>
    %228 = vector.extract_strided_slice %227 {offsets = [0, 0], sizes = [8, 32], strides = [1, 1]} : vector<8x96xf32> to vector<8x32xf32>
    %229 = vector.extract_strided_slice %227 {offsets = [0, 32], sizes = [8, 32], strides = [1, 1]} : vector<8x96xf32> to vector<8x32xf32>
    %230 = vector.extract_strided_slice %227 {offsets = [0, 64], sizes = [8, 32], strides = [1, 1]} : vector<8x96xf32> to vector<8x32xf32>
    %231 = vector.extract_strided_slice %221 {offsets = [0, 96], sizes = [8, 32], strides = [1, 1]} : vector<8x128xf32> to vector<8x32xf32>
    %232 = math.tanh %231 : vector<8x32xf32>
    %233 = arith.mulf %229, %214 : vector<8x32xf32>
    %234 = arith.mulf %228, %232 : vector<8x32xf32>
    %235 = arith.addf %233, %234 : vector<8x32xf32>
    %236 = math.tanh %235 : vector<8x32xf32>
    %237 = arith.mulf %230, %236 : vector<8x32xf32>
    %238 = vector.broadcast %c6_i32 : i32 to vector<8x1xi32>
    %239 = arith.cmpi sgt, %0, %238 : vector<8x1xi32>
    %240 = vector.shape_cast %239 : vector<8x1xi1> to vector<8x1xi1>
    %241 = vector.broadcast %240 : vector<8x1xi1> to vector<8x32xi1>
    %cst_53 = arith.constant 0.000000e+00 : f32
    %242 = vector.broadcast %cst_53 : f32 to vector<8x32xf32>
    %243 = arith.select %241, %237, %242 : vector<8x32xi1>, vector<8x32xf32>
    %cst_54 = arith.constant dense<0.000000e+00> : vector<8x128xf32>
    %244 = tpu.matmul %243, %4, %cst_54 {dimension_numbers = #tpu.dot_dimension_numbers<[1], [0], [0], [1], [0, 0, 1, 1], [], []>} : vector<8x32xf32>, vector<32x128xf32>, vector<8x128xf32> -> vector<8x128xf32>
    %245 = vector.broadcast %5 : vector<1x128xf32> to vector<8x128xf32>
    %246 = arith.addf %244, %245 : vector<8x128xf32>
    %247 = arith.index_cast %217 : i32 to index
    %c0_55 = arith.constant 0 : index
    %248 = vector.load %arg18[%247, %c0_55] : memref<64x128xf32, #tpu.memory_space<vmem>>, vector<8x128xf32>
    tpu.vector_store %arg18[%247, %c0_55], %246 {strides = array<i32>} : memref<64x128xf32, #tpu.memory_space<vmem>>, vector<8x128xf32>,
    %249 = arith.select %241, %235, %214 : vector<8x32xi1>, vector<8x32xf32>
    %250 = arith.select %241, %237, %215 : vector<8x32xi1>, vector<8x32xf32>
    %c7_i32 = arith.constant 7 : i32
    %c8_i32_56 = arith.constant 8 : i32
    %251 = arith.muli %c7_i32, %c8_i32_56 : i32
    %252 = tpu.assume_multiple %251, 8 : i32
    %253 = arith.index_cast %252 : i32 to index
    %c0_57 = arith.constant 0 : index
    %254 = vector.load %arg1[%253, %c0_57] : memref<64x128xf32, #tpu.memory_space<vmem>>, vector<8x128xf32>
    %cst_58 = arith.constant dense<0.000000e+00> : vector<8x128xf32>
    %255 = tpu.matmul %250, %3, %cst_58 {dimension_numbers = #tpu.dot_dimension_numbers<[1], [0], [0], [1], [0, 0, 1, 1], [], []>} : vector<8x32xf32>, vector<32x128xf32>, vector<8x128xf32> -> vector<8x128xf32>
    %256 = arith.addf %254, %255 : vector<8x128xf32>
    %257 = vector.extract_strided_slice %256 {offsets = [0, 0], sizes = [8, 96], strides = [1, 1]} : vector<8x128xf32> to vector<8x96xf32>
    %258 = arith.negf %257 : vector<8x96xf32>
    %259 = math.exp %258 : vector<8x96xf32>
    %cst_59 = arith.constant 1.000000e+00 : f32
    %260 = vector.broadcast %cst_59 : f32 to vector<8x96xf32>
    %261 = arith.addf %260, %259 : vector<8x96xf32>
    %262 = arith.divf %260, %261 : vector<8x96xf32>
    %263 = vector.extract_strided_slice %262 {offsets = [0, 0], sizes = [8, 32], strides = [1, 1]} : vector<8x96xf32> to vector<8x32xf32>
    %264 = vector.extract_strided_slice %262 {offsets = [0, 32], sizes = [8, 32], strides = [1, 1]} : vector<8x96xf32> to vector<8x32xf32>
    %265 = vector.extract_strided_slice %262 {offsets = [0, 64], sizes = [8, 32], strides = [1, 1]} : vector<8x96xf32> to vector<8x32xf32>
    %266 = vector.extract_strided_slice %256 {offsets = [0, 96], sizes = [8, 32], strides = [1, 1]} : vector<8x128xf32> to vector<8x32xf32>
    %267 = math.tanh %266 : vector<8x32xf32>
    %268 = arith.mulf %264, %249 : vector<8x32xf32>
    %269 = arith.mulf %263, %267 : vector<8x32xf32>
    %270 = arith.addf %268, %269 : vector<8x32xf32>
    %271 = math.tanh %270 : vector<8x32xf32>
    %272 = arith.mulf %265, %271 : vector<8x32xf32>
    %273 = vector.broadcast %c7_i32 : i32 to vector<8x1xi32>
    %274 = arith.cmpi sgt, %0, %273 : vector<8x1xi32>
    %275 = vector.shape_cast %274 : vector<8x1xi1> to vector<8x1xi1>
    %276 = vector.broadcast %275 : vector<8x1xi1> to vector<8x32xi1>
    %cst_60 = arith.constant 0.000000e+00 : f32
    %277 = vector.broadcast %cst_60 : f32 to vector<8x32xf32>
    %278 = arith.select %276, %272, %277 : vector<8x32xi1>, vector<8x32xf32>
    %cst_61 = arith.constant dense<0.000000e+00> : vector<8x128xf32>
    %279 = tpu.matmul %278, %4, %cst_61 {dimension_numbers = #tpu.dot_dimension_numbers<[1], [0], [0], [1], [0, 0, 1, 1], [], []>} : vector<8x32xf32>, vector<32x128xf32>, vector<8x128xf32> -> vector<8x128xf32>
    %280 = vector.broadcast %5 : vector<1x128xf32> to vector<8x128xf32>
    %281 = arith.addf %279, %280 : vector<8x128xf32>
    %282 = arith.index_cast %252 : i32 to index
    %c0_62 = arith.constant 0 : index
    %283 = vector.load %arg18[%282, %c0_62] : memref<64x128xf32, #tpu.memory_space<vmem>>, vector<8x128xf32>
    tpu.vector_store %arg18[%282, %c0_62], %281 {strides = array<i32>} : memref<64x128xf32, #tpu.memory_space<vmem>>, vector<8x128xf32>,
    %284 = arith.select %276, %270, %249 : vector<8x32xi1>, vector<8x32xf32>
    %285 = arith.select %276, %272, %250 : vector<8x32xi1>, vector<8x32xf32>
    %c8_i32_63 = arith.constant 8 : i32
    %c0_64 = arith.constant 0 : index
    %c0_65 = arith.constant 0 : index
    %286 = vector.load %arg6[%c0_64, %c0_65] : memref<32x128xf32, #tpu.memory_space<vmem>>, vector<32x128xf32>
    %c0_i32_66 = arith.constant 0 : i32
    %c8_i32_67 = arith.constant 8 : i32
    %287 = arith.muli %c0_i32_66, %c8_i32_67 : i32
    %288 = tpu.assume_multiple %287, 8 : i32
    %289 = arith.index_cast %288 : i32 to index
    %c0_68 = arith.constant 0 : index
    %290 = vector.load %arg18[%289, %c0_68] : memref<64x128xf32, #tpu.memory_space<vmem>>, vector<8x128xf32>
    %cst_69 = arith.constant dense<0.000000e+00> : vector<8x128xf32>
    %291 = tpu.matmul %285, %286, %cst_69 {dimension_numbers = #tpu.dot_dimension_numbers<[1], [0], [0], [1], [0, 0, 1, 1], [], []>} : vector<8x32xf32>, vector<32x128xf32>, vector<8x128xf32> -> vector<8x128xf32>
    %292 = arith.addf %290, %291 : vector<8x128xf32>
    %293 = vector.extract_strided_slice %292 {offsets = [0, 0], sizes = [8, 96], strides = [1, 1]} : vector<8x128xf32> to vector<8x96xf32>
    %294 = arith.negf %293 : vector<8x96xf32>
    %295 = math.exp %294 : vector<8x96xf32>
    %cst_70 = arith.constant 1.000000e+00 : f32
    %296 = vector.broadcast %cst_70 : f32 to vector<8x96xf32>
    %297 = arith.addf %296, %295 : vector<8x96xf32>
    %298 = arith.divf %296, %297 : vector<8x96xf32>
    %299 = vector.extract_strided_slice %298 {offsets = [0, 0], sizes = [8, 32], strides = [1, 1]} : vector<8x96xf32> to vector<8x32xf32>
    %300 = vector.extract_strided_slice %298 {offsets = [0, 32], sizes = [8, 32], strides = [1, 1]} : vector<8x96xf32> to vector<8x32xf32>
    %301 = vector.extract_strided_slice %298 {offsets = [0, 64], sizes = [8, 32], strides = [1, 1]} : vector<8x96xf32> to vector<8x32xf32>
    %302 = vector.extract_strided_slice %292 {offsets = [0, 96], sizes = [8, 32], strides = [1, 1]} : vector<8x128xf32> to vector<8x32xf32>
    %303 = math.tanh %302 : vector<8x32xf32>
    %304 = arith.mulf %300, %284 : vector<8x32xf32>
    %305 = arith.mulf %299, %303 : vector<8x32xf32>
    %306 = arith.addf %304, %305 : vector<8x32xf32>
    %307 = math.tanh %306 : vector<8x32xf32>
    %308 = arith.mulf %301, %307 : vector<8x32xf32>
    %309 = vector.broadcast %c0_i32_66 : i32 to vector<8x1xi32>
    %310 = arith.cmpi sgt, %0, %309 : vector<8x1xi32>
    %311 = vector.shape_cast %310 : vector<8x1xi1> to vector<8x1xi1>
    %312 = vector.broadcast %311 : vector<8x1xi1> to vector<8x32xi1>
    %313 = arith.select %312, %306, %284 : vector<8x32xi1>, vector<8x32xf32>
    %314 = arith.select %312, %308, %285 : vector<8x32xi1>, vector<8x32xf32>
    %c1_i32_71 = arith.constant 1 : i32
    %c8_i32_72 = arith.constant 8 : i32
    %315 = arith.muli %c1_i32_71, %c8_i32_72 : i32
    %316 = tpu.assume_multiple %315, 8 : i32
    %317 = arith.index_cast %316 : i32 to index
    %c0_73 = arith.constant 0 : index
    %318 = vector.load %arg18[%317, %c0_73] : memref<64x128xf32, #tpu.memory_space<vmem>>, vector<8x128xf32>
    %cst_74 = arith.constant dense<0.000000e+00> : vector<8x128xf32>
    %319 = tpu.matmul %314, %286, %cst_74 {dimension_numbers = #tpu.dot_dimension_numbers<[1], [0], [0], [1], [0, 0, 1, 1], [], []>} : vector<8x32xf32>, vector<32x128xf32>, vector<8x128xf32> -> vector<8x128xf32>
    %320 = arith.addf %318, %319 : vector<8x128xf32>
    %321 = vector.extract_strided_slice %320 {offsets = [0, 0], sizes = [8, 96], strides = [1, 1]} : vector<8x128xf32> to vector<8x96xf32>
    %322 = arith.negf %321 : vector<8x96xf32>
    %323 = math.exp %322 : vector<8x96xf32>
    %cst_75 = arith.constant 1.000000e+00 : f32
    %324 = vector.broadcast %cst_75 : f32 to vector<8x96xf32>
    %325 = arith.addf %324, %323 : vector<8x96xf32>
    %326 = arith.divf %324, %325 : vector<8x96xf32>
    %327 = vector.extract_strided_slice %326 {offsets = [0, 0], sizes = [8, 32], strides = [1, 1]} : vector<8x96xf32> to vector<8x32xf32>
    %328 = vector.extract_strided_slice %326 {offsets = [0, 32], sizes = [8, 32], strides = [1, 1]} : vector<8x96xf32> to vector<8x32xf32>
    %329 = vector.extract_strided_slice %326 {offsets = [0, 64], sizes = [8, 32], strides = [1, 1]} : vector<8x96xf32> to vector<8x32xf32>
    %330 = vector.extract_strided_slice %320 {offsets = [0, 96], sizes = [8, 32], strides = [1, 1]} : vector<8x128xf32> to vector<8x32xf32>
    %331 = math.tanh %330 : vector<8x32xf32>
    %332 = arith.mulf %328, %313 : vector<8x32xf32>
    %333 = arith.mulf %327, %331 : vector<8x32xf32>
    %334 = arith.addf %332, %333 : vector<8x32xf32>
    %335 = math.tanh %334 : vector<8x32xf32>
    %336 = arith.mulf %329, %335 : vector<8x32xf32>
    %337 = vector.broadcast %c1_i32_71 : i32 to vector<8x1xi32>
    %338 = arith.cmpi sgt, %0, %337 : vector<8x1xi32>
    %339 = vector.shape_cast %338 : vector<8x1xi1> to vector<8x1xi1>
    %340 = vector.broadcast %339 : vector<8x1xi1> to vector<8x32xi1>
    %341 = arith.select %340, %334, %313 : vector<8x32xi1>, vector<8x32xf32>
    %342 = arith.select %340, %336, %314 : vector<8x32xi1>, vector<8x32xf32>
    %c2_i32_76 = arith.constant 2 : i32
    %c8_i32_77 = arith.constant 8 : i32
    %343 = arith.muli %c2_i32_76, %c8_i32_77 : i32
    %344 = tpu.assume_multiple %343, 8 : i32
    %345 = arith.index_cast %344 : i32 to index
    %c0_78 = arith.constant 0 : index
    %346 = vector.load %arg18[%345, %c0_78] : memref<64x128xf32, #tpu.memory_space<vmem>>, vector<8x128xf32>
    %cst_79 = arith.constant dense<0.000000e+00> : vector<8x128xf32>
    %347 = tpu.matmul %342, %286, %cst_79 {dimension_numbers = #tpu.dot_dimension_numbers<[1], [0], [0], [1], [0, 0, 1, 1], [], []>} : vector<8x32xf32>, vector<32x128xf32>, vector<8x128xf32> -> vector<8x128xf32>
    %348 = arith.addf %346, %347 : vector<8x128xf32>
    %349 = vector.extract_strided_slice %348 {offsets = [0, 0], sizes = [8, 96], strides = [1, 1]} : vector<8x128xf32> to vector<8x96xf32>
    %350 = arith.negf %349 : vector<8x96xf32>
    %351 = math.exp %350 : vector<8x96xf32>
    %cst_80 = arith.constant 1.000000e+00 : f32
    %352 = vector.broadcast %cst_80 : f32 to vector<8x96xf32>
    %353 = arith.addf %352, %351 : vector<8x96xf32>
    %354 = arith.divf %352, %353 : vector<8x96xf32>
    %355 = vector.extract_strided_slice %354 {offsets = [0, 0], sizes = [8, 32], strides = [1, 1]} : vector<8x96xf32> to vector<8x32xf32>
    %356 = vector.extract_strided_slice %354 {offsets = [0, 32], sizes = [8, 32], strides = [1, 1]} : vector<8x96xf32> to vector<8x32xf32>
    %357 = vector.extract_strided_slice %354 {offsets = [0, 64], sizes = [8, 32], strides = [1, 1]} : vector<8x96xf32> to vector<8x32xf32>
    %358 = vector.extract_strided_slice %348 {offsets = [0, 96], sizes = [8, 32], strides = [1, 1]} : vector<8x128xf32> to vector<8x32xf32>
    %359 = math.tanh %358 : vector<8x32xf32>
    %360 = arith.mulf %356, %341 : vector<8x32xf32>
    %361 = arith.mulf %355, %359 : vector<8x32xf32>
    %362 = arith.addf %360, %361 : vector<8x32xf32>
    %363 = math.tanh %362 : vector<8x32xf32>
    %364 = arith.mulf %357, %363 : vector<8x32xf32>
    %365 = vector.broadcast %c2_i32_76 : i32 to vector<8x1xi32>
    %366 = arith.cmpi sgt, %0, %365 : vector<8x1xi32>
    %367 = vector.shape_cast %366 : vector<8x1xi1> to vector<8x1xi1>
    %368 = vector.broadcast %367 : vector<8x1xi1> to vector<8x32xi1>
    %369 = arith.select %368, %362, %341 : vector<8x32xi1>, vector<8x32xf32>
    %370 = arith.select %368, %364, %342 : vector<8x32xi1>, vector<8x32xf32>
    %c3_i32_81 = arith.constant 3 : i32
    %c8_i32_82 = arith.constant 8 : i32
    %371 = arith.muli %c3_i32_81, %c8_i32_82 : i32
    %372 = tpu.assume_multiple %371, 8 : i32
    %373 = arith.index_cast %372 : i32 to index
    %c0_83 = arith.constant 0 : index
    %374 = vector.load %arg18[%373, %c0_83] : memref<64x128xf32, #tpu.memory_space<vmem>>, vector<8x128xf32>
    %cst_84 = arith.constant dense<0.000000e+00> : vector<8x128xf32>
    %375 = tpu.matmul %370, %286, %cst_84 {dimension_numbers = #tpu.dot_dimension_numbers<[1], [0], [0], [1], [0, 0, 1, 1], [], []>} : vector<8x32xf32>, vector<32x128xf32>, vector<8x128xf32> -> vector<8x128xf32>
    %376 = arith.addf %374, %375 : vector<8x128xf32>
    %377 = vector.extract_strided_slice %376 {offsets = [0, 0], sizes = [8, 96], strides = [1, 1]} : vector<8x128xf32> to vector<8x96xf32>
    %378 = arith.negf %377 : vector<8x96xf32>
    %379 = math.exp %378 : vector<8x96xf32>
    %cst_85 = arith.constant 1.000000e+00 : f32
    %380 = vector.broadcast %cst_85 : f32 to vector<8x96xf32>
    %381 = arith.addf %380, %379 : vector<8x96xf32>
    %382 = arith.divf %380, %381 : vector<8x96xf32>
    %383 = vector.extract_strided_slice %382 {offsets = [0, 0], sizes = [8, 32], strides = [1, 1]} : vector<8x96xf32> to vector<8x32xf32>
    %384 = vector.extract_strided_slice %382 {offsets = [0, 32], sizes = [8, 32], strides = [1, 1]} : vector<8x96xf32> to vector<8x32xf32>
    %385 = vector.extract_strided_slice %382 {offsets = [0, 64], sizes = [8, 32], strides = [1, 1]} : vector<8x96xf32> to vector<8x32xf32>
    %386 = vector.extract_strided_slice %376 {offsets = [0, 96], sizes = [8, 32], strides = [1, 1]} : vector<8x128xf32> to vector<8x32xf32>
    %387 = math.tanh %386 : vector<8x32xf32>
    %388 = arith.mulf %384, %369 : vector<8x32xf32>
    %389 = arith.mulf %383, %387 : vector<8x32xf32>
    %390 = arith.addf %388, %389 : vector<8x32xf32>
    %391 = math.tanh %390 : vector<8x32xf32>
    %392 = arith.mulf %385, %391 : vector<8x32xf32>
    %393 = vector.broadcast %c3_i32_81 : i32 to vector<8x1xi32>
    %394 = arith.cmpi sgt, %0, %393 : vector<8x1xi32>
    %395 = vector.shape_cast %394 : vector<8x1xi1> to vector<8x1xi1>
    %396 = vector.broadcast %395 : vector<8x1xi1> to vector<8x32xi1>
    %397 = arith.select %396, %390, %369 : vector<8x32xi1>, vector<8x32xf32>
    %398 = arith.select %396, %392, %370 : vector<8x32xi1>, vector<8x32xf32>
    %c4_i32_86 = arith.constant 4 : i32
    %c8_i32_87 = arith.constant 8 : i32
    %399 = arith.muli %c4_i32_86, %c8_i32_87 : i32
    %400 = tpu.assume_multiple %399, 8 : i32
    %401 = arith.index_cast %400 : i32 to index
    %c0_88 = arith.constant 0 : index
    %402 = vector.load %arg18[%401, %c0_88] : memref<64x128xf32, #tpu.memory_space<vmem>>, vector<8x128xf32>
    %cst_89 = arith.constant dense<0.000000e+00> : vector<8x128xf32>
    %403 = tpu.matmul %398, %286, %cst_89 {dimension_numbers = #tpu.dot_dimension_numbers<[1], [0], [0], [1], [0, 0, 1, 1], [], []>} : vector<8x32xf32>, vector<32x128xf32>, vector<8x128xf32> -> vector<8x128xf32>
    %404 = arith.addf %402, %403 : vector<8x128xf32>
    %405 = vector.extract_strided_slice %404 {offsets = [0, 0], sizes = [8, 96], strides = [1, 1]} : vector<8x128xf32> to vector<8x96xf32>
    %406 = arith.negf %405 : vector<8x96xf32>
    %407 = math.exp %406 : vector<8x96xf32>
    %cst_90 = arith.constant 1.000000e+00 : f32
    %408 = vector.broadcast %cst_90 : f32 to vector<8x96xf32>
    %409 = arith.addf %408, %407 : vector<8x96xf32>
    %410 = arith.divf %408, %409 : vector<8x96xf32>
    %411 = vector.extract_strided_slice %410 {offsets = [0, 0], sizes = [8, 32], strides = [1, 1]} : vector<8x96xf32> to vector<8x32xf32>
    %412 = vector.extract_strided_slice %410 {offsets = [0, 32], sizes = [8, 32], strides = [1, 1]} : vector<8x96xf32> to vector<8x32xf32>
    %413 = vector.extract_strided_slice %410 {offsets = [0, 64], sizes = [8, 32], strides = [1, 1]} : vector<8x96xf32> to vector<8x32xf32>
    %414 = vector.extract_strided_slice %404 {offsets = [0, 96], sizes = [8, 32], strides = [1, 1]} : vector<8x128xf32> to vector<8x32xf32>
    %415 = math.tanh %414 : vector<8x32xf32>
    %416 = arith.mulf %412, %397 : vector<8x32xf32>
    %417 = arith.mulf %411, %415 : vector<8x32xf32>
    %418 = arith.addf %416, %417 : vector<8x32xf32>
    %419 = math.tanh %418 : vector<8x32xf32>
    %420 = arith.mulf %413, %419 : vector<8x32xf32>
    %421 = vector.broadcast %c4_i32_86 : i32 to vector<8x1xi32>
    %422 = arith.cmpi sgt, %0, %421 : vector<8x1xi32>
    %423 = vector.shape_cast %422 : vector<8x1xi1> to vector<8x1xi1>
    %424 = vector.broadcast %423 : vector<8x1xi1> to vector<8x32xi1>
    %425 = arith.select %424, %418, %397 : vector<8x32xi1>, vector<8x32xf32>
    %426 = arith.select %424, %420, %398 : vector<8x32xi1>, vector<8x32xf32>
    %c5_i32_91 = arith.constant 5 : i32
    %c8_i32_92 = arith.constant 8 : i32
    %427 = arith.muli %c5_i32_91, %c8_i32_92 : i32
    %428 = tpu.assume_multiple %427, 8 : i32
    %429 = arith.index_cast %428 : i32 to index
    %c0_93 = arith.constant 0 : index
    %430 = vector.load %arg18[%429, %c0_93] : memref<64x128xf32, #tpu.memory_space<vmem>>, vector<8x128xf32>
    %cst_94 = arith.constant dense<0.000000e+00> : vector<8x128xf32>
    %431 = tpu.matmul %426, %286, %cst_94 {dimension_numbers = #tpu.dot_dimension_numbers<[1], [0], [0], [1], [0, 0, 1, 1], [], []>} : vector<8x32xf32>, vector<32x128xf32>, vector<8x128xf32> -> vector<8x128xf32>
    %432 = arith.addf %430, %431 : vector<8x128xf32>
    %433 = vector.extract_strided_slice %432 {offsets = [0, 0], sizes = [8, 96], strides = [1, 1]} : vector<8x128xf32> to vector<8x96xf32>
    %434 = arith.negf %433 : vector<8x96xf32>
    %435 = math.exp %434 : vector<8x96xf32>
    %cst_95 = arith.constant 1.000000e+00 : f32
    %436 = vector.broadcast %cst_95 : f32 to vector<8x96xf32>
    %437 = arith.addf %436, %435 : vector<8x96xf32>
    %438 = arith.divf %436, %437 : vector<8x96xf32>
    %439 = vector.extract_strided_slice %438 {offsets = [0, 0], sizes = [8, 32], strides = [1, 1]} : vector<8x96xf32> to vector<8x32xf32>
    %440 = vector.extract_strided_slice %438 {offsets = [0, 32], sizes = [8, 32], strides = [1, 1]} : vector<8x96xf32> to vector<8x32xf32>
    %441 = vector.extract_strided_slice %438 {offsets = [0, 64], sizes = [8, 32], strides = [1, 1]} : vector<8x96xf32> to vector<8x32xf32>
    %442 = vector.extract_strided_slice %432 {offsets = [0, 96], sizes = [8, 32], strides = [1, 1]} : vector<8x128xf32> to vector<8x32xf32>
    %443 = math.tanh %442 : vector<8x32xf32>
    %444 = arith.mulf %440, %425 : vector<8x32xf32>
    %445 = arith.mulf %439, %443 : vector<8x32xf32>
    %446 = arith.addf %444, %445 : vector<8x32xf32>
    %447 = math.tanh %446 : vector<8x32xf32>
    %448 = arith.mulf %441, %447 : vector<8x32xf32>
    %449 = vector.broadcast %c5_i32_91 : i32 to vector<8x1xi32>
    %450 = arith.cmpi sgt, %0, %449 : vector<8x1xi32>
    %451 = vector.shape_cast %450 : vector<8x1xi1> to vector<8x1xi1>
    %452 = vector.broadcast %451 : vector<8x1xi1> to vector<8x32xi1>
    %453 = arith.select %452, %446, %425 : vector<8x32xi1>, vector<8x32xf32>
    %454 = arith.select %452, %448, %426 : vector<8x32xi1>, vector<8x32xf32>
    %c6_i32_96 = arith.constant 6 : i32
    %c8_i32_97 = arith.constant 8 : i32
    %455 = arith.muli %c6_i32_96, %c8_i32_97 : i32
    %456 = tpu.assume_multiple %455, 8 : i32
    %457 = arith.index_cast %456 : i32 to index
    %c0_98 = arith.constant 0 : index
    %458 = vector.load %arg18[%457, %c0_98] : memref<64x128xf32, #tpu.memory_space<vmem>>, vector<8x128xf32>
    %cst_99 = arith.constant dense<0.000000e+00> : vector<8x128xf32>
    %459 = tpu.matmul %454, %286, %cst_99 {dimension_numbers = #tpu.dot_dimension_numbers<[1], [0], [0], [1], [0, 0, 1, 1], [], []>} : vector<8x32xf32>, vector<32x128xf32>, vector<8x128xf32> -> vector<8x128xf32>
    %460 = arith.addf %458, %459 : vector<8x128xf32>
    %461 = vector.extract_strided_slice %460 {offsets = [0, 0], sizes = [8, 96], strides = [1, 1]} : vector<8x128xf32> to vector<8x96xf32>
    %462 = arith.negf %461 : vector<8x96xf32>
    %463 = math.exp %462 : vector<8x96xf32>
    %cst_100 = arith.constant 1.000000e+00 : f32
    %464 = vector.broadcast %cst_100 : f32 to vector<8x96xf32>
    %465 = arith.addf %464, %463 : vector<8x96xf32>
    %466 = arith.divf %464, %465 : vector<8x96xf32>
    %467 = vector.extract_strided_slice %466 {offsets = [0, 0], sizes = [8, 32], strides = [1, 1]} : vector<8x96xf32> to vector<8x32xf32>
    %468 = vector.extract_strided_slice %466 {offsets = [0, 32], sizes = [8, 32], strides = [1, 1]} : vector<8x96xf32> to vector<8x32xf32>
    %469 = vector.extract_strided_slice %466 {offsets = [0, 64], sizes = [8, 32], strides = [1, 1]} : vector<8x96xf32> to vector<8x32xf32>
    %470 = vector.extract_strided_slice %460 {offsets = [0, 96], sizes = [8, 32], strides = [1, 1]} : vector<8x128xf32> to vector<8x32xf32>
    %471 = math.tanh %470 : vector<8x32xf32>
    %472 = arith.mulf %468, %453 : vector<8x32xf32>
    %473 = arith.mulf %467, %471 : vector<8x32xf32>
    %474 = arith.addf %472, %473 : vector<8x32xf32>
    %475 = math.tanh %474 : vector<8x32xf32>
    %476 = arith.mulf %469, %475 : vector<8x32xf32>
    %477 = vector.broadcast %c6_i32_96 : i32 to vector<8x1xi32>
    %478 = arith.cmpi sgt, %0, %477 : vector<8x1xi32>
    %479 = vector.shape_cast %478 : vector<8x1xi1> to vector<8x1xi1>
    %480 = vector.broadcast %479 : vector<8x1xi1> to vector<8x32xi1>
    %481 = arith.select %480, %474, %453 : vector<8x32xi1>, vector<8x32xf32>
    %482 = arith.select %480, %476, %454 : vector<8x32xi1>, vector<8x32xf32>
    %c7_i32_101 = arith.constant 7 : i32
    %c8_i32_102 = arith.constant 8 : i32
    %483 = arith.muli %c7_i32_101, %c8_i32_102 : i32
    %484 = tpu.assume_multiple %483, 8 : i32
    %485 = arith.index_cast %484 : i32 to index
    %c0_103 = arith.constant 0 : index
    %486 = vector.load %arg18[%485, %c0_103] : memref<64x128xf32, #tpu.memory_space<vmem>>, vector<8x128xf32>
    %cst_104 = arith.constant dense<0.000000e+00> : vector<8x128xf32>
    %487 = tpu.matmul %482, %286, %cst_104 {dimension_numbers = #tpu.dot_dimension_numbers<[1], [0], [0], [1], [0, 0, 1, 1], [], []>} : vector<8x32xf32>, vector<32x128xf32>, vector<8x128xf32> -> vector<8x128xf32>
    %488 = arith.addf %486, %487 : vector<8x128xf32>
    %489 = vector.extract_strided_slice %488 {offsets = [0, 0], sizes = [8, 96], strides = [1, 1]} : vector<8x128xf32> to vector<8x96xf32>
    %490 = arith.negf %489 : vector<8x96xf32>
    %491 = math.exp %490 : vector<8x96xf32>
    %cst_105 = arith.constant 1.000000e+00 : f32
    %492 = vector.broadcast %cst_105 : f32 to vector<8x96xf32>
    %493 = arith.addf %492, %491 : vector<8x96xf32>
    %494 = arith.divf %492, %493 : vector<8x96xf32>
    %495 = vector.extract_strided_slice %494 {offsets = [0, 0], sizes = [8, 32], strides = [1, 1]} : vector<8x96xf32> to vector<8x32xf32>
    %496 = vector.extract_strided_slice %494 {offsets = [0, 32], sizes = [8, 32], strides = [1, 1]} : vector<8x96xf32> to vector<8x32xf32>
    %497 = vector.extract_strided_slice %494 {offsets = [0, 64], sizes = [8, 32], strides = [1, 1]} : vector<8x96xf32> to vector<8x32xf32>
    %498 = vector.extract_strided_slice %488 {offsets = [0, 96], sizes = [8, 32], strides = [1, 1]} : vector<8x128xf32> to vector<8x32xf32>
    %499 = math.tanh %498 : vector<8x32xf32>
    %500 = arith.mulf %496, %481 : vector<8x32xf32>
    %501 = arith.mulf %495, %499 : vector<8x32xf32>
    %502 = arith.addf %500, %501 : vector<8x32xf32>
    %503 = math.tanh %502 : vector<8x32xf32>
    %504 = arith.mulf %497, %503 : vector<8x32xf32>
    %505 = vector.broadcast %c7_i32_101 : i32 to vector<8x1xi32>
    %506 = arith.cmpi sgt, %0, %505 : vector<8x1xi32>
    %507 = vector.shape_cast %506 : vector<8x1xi1> to vector<8x1xi1>
    %508 = vector.broadcast %507 : vector<8x1xi1> to vector<8x32xi1>
    %509 = arith.select %508, %502, %481 : vector<8x32xi1>, vector<8x32xf32>
    %510 = arith.select %508, %504, %482 : vector<8x32xi1>, vector<8x32xf32>
    %c8_i32_106 = arith.constant 8 : i32
    %c0_107 = arith.constant 0 : index
    %c0_108 = arith.constant 0 : index
    %511 = vector.load %arg3[%c0_107, %c0_108] : memref<8x4xf32, #tpu.memory_space<vmem>>, vector<8x4xf32>
    %c0_109 = arith.constant 0 : index
    %c0_110 = arith.constant 0 : index
    %512 = vector.load %arg8[%c0_109, %c0_110] : memref<4x32xf32, #tpu.memory_space<vmem>>, vector<4x32xf32>
    %cst_111 = arith.constant dense<0.000000e+00> : vector<8x32xf32>
    %513 = tpu.matmul %511, %512, %cst_111 {dimension_numbers = #tpu.dot_dimension_numbers<[1], [0], [0], [1], [0, 0, 1, 1], [], []>} : vector<8x4xf32>, vector<4x32xf32>, vector<8x32xf32> -> vector<8x32xf32>
    %c0_112 = arith.constant 0 : index
    %c0_113 = arith.constant 0 : index
    %514 = vector.load %arg9[%c0_112, %c0_113] : memref<32x32xf32, #tpu.memory_space<vmem>>, vector<32x32xf32>
    %cst_114 = arith.constant dense<0.000000e+00> : vector<8x32xf32>
    %515 = tpu.matmul %510, %514, %cst_114 {dimension_numbers = #tpu.dot_dimension_numbers<[1], [0], [0], [1], [0, 0, 1, 1], [], []>} : vector<8x32xf32>, vector<32x32xf32>, vector<8x32xf32> -> vector<8x32xf32>
    %516 = arith.addf %513, %515 : vector<8x32xf32>
    %c0_115 = arith.constant 0 : index
    %c0_116 = arith.constant 0 : index
    %517 = vector.load %arg10[%c0_115, %c0_116] : memref<1x32xf32, #tpu.memory_space<vmem>>, vector<1x32xf32>
    %518 = vector.broadcast %517 : vector<1x32xf32> to vector<8x32xf32>
    %519 = arith.addf %516, %518 : vector<8x32xf32>
    %cst_117 = arith.constant 0.000000e+00 : f32
    %520 = vector.broadcast %cst_117 : f32 to vector<8x32xf32>
    %521 = arith.maximumf %519, %520 : vector<8x32xf32>
    %c0_118 = arith.constant 0 : index
    %c0_119 = arith.constant 0 : index
    %522 = vector.load %arg11[%c0_118, %c0_119] : memref<32x32xf32, #tpu.memory_space<vmem>>, vector<32x32xf32>
    %cst_120 = arith.constant dense<0.000000e+00> : vector<8x32xf32>
    %523 = tpu.matmul %521, %522, %cst_120 {dimension_numbers = #tpu.dot_dimension_numbers<[1], [0], [0], [1], [0, 0, 1, 1], [], []>} : vector<8x32xf32>, vector<32x32xf32>, vector<8x32xf32> -> vector<8x32xf32>
    %c0_121 = arith.constant 0 : index
    %c0_122 = arith.constant 0 : index
    %524 = vector.load %arg12[%c0_121, %c0_122] : memref<1x32xf32, #tpu.memory_space<vmem>>, vector<1x32xf32>
    %525 = vector.broadcast %524 : vector<1x32xf32> to vector<8x32xf32>
    %526 = arith.addf %523, %525 : vector<8x32xf32>
    %cst_123 = arith.constant 0.000000e+00 : f32
    %527 = vector.broadcast %cst_123 : f32 to vector<8x32xf32>
    %528 = arith.maximumf %526, %527 : vector<8x32xf32>
    %c0_124 = arith.constant 0 : index
    %c0_125 = arith.constant 0 : index
    %529 = vector.load %arg13[%c0_124, %c0_125] : memref<32x10xf32, #tpu.memory_space<vmem>>, vector<32x10xf32>
    %cst_126 = arith.constant dense<0.000000e+00> : vector<8x10xf32>
    %530 = tpu.matmul %528, %529, %cst_126 {dimension_numbers = #tpu.dot_dimension_numbers<[1], [0], [0], [1], [0, 0, 1, 1], [], []>} : vector<8x32xf32>, vector<32x10xf32>, vector<8x10xf32> -> vector<8x10xf32>
    %c0_127 = arith.constant 0 : index
    %c0_128 = arith.constant 0 : index
    %531 = vector.load %arg14[%c0_127, %c0_128] : memref<1x10xf32, #tpu.memory_space<vmem>>, vector<1x10xf32>
    %532 = vector.broadcast %531 : vector<1x10xf32> to vector<8x10xf32>
    %533 = arith.addf %530, %532 : vector<8x10xf32>
    %cst_129 = arith.constant 0.000000e+00 : f32
    %534 = vector.broadcast %cst_129 : f32 to vector<8x10xf32>
    %535 = arith.maximumf %533, %534 : vector<8x10xf32>
    %c0_130 = arith.constant 0 : index
    %c0_131 = arith.constant 0 : index
    %536 = vector.load %arg15[%c0_130, %c0_131] : memref<10x1xf32, #tpu.memory_space<vmem>>, vector<10x1xf32>
    %cst_132 = arith.constant dense<0.000000e+00> : vector<8x1xf32>
    %537 = tpu.matmul %535, %536, %cst_132 {dimension_numbers = #tpu.dot_dimension_numbers<[1], [0], [0], [1], [0, 0, 1, 1], [], []>} : vector<8x10xf32>, vector<10x1xf32>, vector<8x1xf32> -> vector<8x1xf32>
    %c0_133 = arith.constant 0 : index
    %c0_134 = arith.constant 0 : index
    %538 = vector.load %arg16[%c0_133, %c0_134] : memref<1x1xf32, #tpu.memory_space<vmem>>, vector<1x1xf32>
    %539 = vector.broadcast %538 : vector<1x1xf32> to vector<8x1xf32>
    %540 = arith.addf %537, %539 : vector<8x1xf32>
    %c0_135 = arith.constant 0 : index
    %c0_136 = arith.constant 0 : index
    %541 = vector.load %arg17[%c0_135, %c0_136] : memref<8x1xf32, #tpu.memory_space<vmem>>, vector<8x1xf32>
    tpu.vector_store %arg17[%c0_135, %c0_136], %540 {strides = array<i32>} : memref<8x1xf32, #tpu.memory_space<vmem>>, vector<8x1xf32>,
    return
  }
  func.func @transform_0(%arg0: i32) -> (i32, i32) {
    %c0_i32 = arith.constant 0 : i32
    %c0_i32_0 = arith.constant 0 : i32
    %c0_i32_1 = arith.constant 0 : i32
    return %c0_i32, %c0_i32_0 : i32, i32
  }
  func.func @transform_1(%arg0: i32) -> (i32, i32) {
    %c0_i32 = arith.constant 0 : i32
    %c0_i32_0 = arith.constant 0 : i32
    %c0_i32_1 = arith.constant 0 : i32
    return %c0_i32, %c0_i32_0 : i32, i32
  }
  func.func @transform_2(%arg0: i32) -> (i32, i32) {
    %c0_i32 = arith.constant 0 : i32
    %c0_i32_0 = arith.constant 0 : i32
    %c0_i32_1 = arith.constant 0 : i32
    return %c0_i32, %c0_i32_0 : i32, i32
  }
  func.func @transform_3(%arg0: i32) -> (i32, i32) {
    %c0_i32 = arith.constant 0 : i32
    %c0_i32_0 = arith.constant 0 : i32
    %c0_i32_1 = arith.constant 0 : i32
    return %c0_i32, %c0_i32_0 : i32, i32
  }
  func.func @transform_4(%arg0: i32) -> (i32, i32) {
    %c0_i32 = arith.constant 0 : i32
    %c0_i32_0 = arith.constant 0 : i32
    %c0_i32_1 = arith.constant 0 : i32
    return %c0_i32, %c0_i32_0 : i32, i32
  }
  func.func @transform_5(%arg0: i32) -> (i32, i32) {
    %c0_i32 = arith.constant 0 : i32
    %c0_i32_0 = arith.constant 0 : i32
    %c0_i32_1 = arith.constant 0 : i32
    return %c0_i32, %c0_i32_0 : i32, i32
  }
  func.func @transform_6(%arg0: i32) -> (i32, i32) {
    %c0_i32 = arith.constant 0 : i32
    %c0_i32_0 = arith.constant 0 : i32
    %c0_i32_1 = arith.constant 0 : i32
    return %c0_i32, %c0_i32_0 : i32, i32
  }
  func.func @transform_7(%arg0: i32) -> (i32, i32) {
    %c0_i32 = arith.constant 0 : i32
    %c0_i32_0 = arith.constant 0 : i32
    %c0_i32_1 = arith.constant 0 : i32
    return %c0_i32, %c0_i32_0 : i32, i32
  }
  func.func @transform_8(%arg0: i32) -> (i32, i32) {
    %c0_i32 = arith.constant 0 : i32
    %c0_i32_0 = arith.constant 0 : i32
    %c0_i32_1 = arith.constant 0 : i32
    return %c0_i32, %c0_i32_0 : i32, i32
  }
  func.func @transform_9(%arg0: i32) -> (i32, i32) {
    %c0_i32 = arith.constant 0 : i32
    %c0_i32_0 = arith.constant 0 : i32
    %c0_i32_1 = arith.constant 0 : i32
    return %c0_i32, %c0_i32_0 : i32, i32
  }
  func.func @transform_10(%arg0: i32) -> (i32, i32) {
    %c0_i32 = arith.constant 0 : i32
    %c0_i32_0 = arith.constant 0 : i32
    %c0_i32_1 = arith.constant 0 : i32
    return %c0_i32, %c0_i32_0 : i32, i32
  }
  func.func @transform_11(%arg0: i32) -> (i32, i32) {
    %c0_i32 = arith.constant 0 : i32
    %c0_i32_0 = arith.constant 0 : i32
    %c0_i32_1 = arith.constant 0 : i32
    return %c0_i32, %c0_i32_0 : i32, i32
  }
  func.func @transform_12(%arg0: i32) -> (i32, i32) {
    %c0_i32 = arith.constant 0 : i32
    %c0_i32_0 = arith.constant 0 : i32
    %c0_i32_1 = arith.constant 0 : i32
    return %c0_i32, %c0_i32_0 : i32, i32
  }
  func.func @transform_13(%arg0: i32) -> (i32, i32) {
    %c0_i32 = arith.constant 0 : i32
    %c0_i32_0 = arith.constant 0 : i32
    %c0_i32_1 = arith.constant 0 : i32
    return %c0_i32, %c0_i32_0 : i32, i32
  }
  func.func @transform_14(%arg0: i32) -> (i32, i32) {
    %c0_i32 = arith.constant 0 : i32
    %c0_i32_0 = arith.constant 0 : i32
    %c0_i32_1 = arith.constant 0 : i32
    return %c0_i32, %c0_i32_0 : i32, i32
  }
  func.func @transform_15(%arg0: i32) -> (i32, i32) {
    %c0_i32 = arith.constant 0 : i32
    %c0_i32_0 = arith.constant 0 : i32
    %c0_i32_1 = arith.constant 0 : i32
    return %c0_i32, %c0_i32_0 : i32, i32
  }
  func.func @transform_16(%arg0: i32) -> (i32, i32) {
    %c0_i32 = arith.constant 0 : i32
    %c0_i32_0 = arith.constant 0 : i32
    %c0_i32_1 = arith.constant 0 : i32
    return %c0_i32, %c0_i32_0 : i32, i32
  }
}

</mosaic_0001>

<bundles_post_ra>
// kernel: lstm_model_forward.1
= control target key start
LH: loop header
LB: loop body
LE: loop exit
PB: predicated region body
PF: predicated region fallthrough
CT: control target
= control target key end

     0   :  { %v1764_v4 = vmov 0.0   ;;  %s1765_s17 = smov 32   ;;  %v1766_v24 = vmov 0   ;;  %s1767_s27 = smov 64   ;;  %vm66_vm6 = vcmask 261120   ;;  %s2410_s3 = inlined_call_operand.vmem [shape: f32[32,128], index: 3, kind: input, shape index: {}]   ;;  %s2411_s0 = inlined_call_operand.vmem [shape: f32[64,128], index: 0, kind: input, shape index: {}]   ;;  %s2412_s1 = inlined_call_operand.vmem [shape: s32[8,1], index: 1, kind: input, shape index: {}]   ;;  %s2413_s6 = inlined_call_operand.vmem [shape: f32[1,128], index: 6, kind: input, shape index: {}]   ;;  %s2414_s4 = inlined_call_operand.vmem [shape: f32[32,128], index: 4, kind: input, shape index: {}]   ;;  %s2415_s5 = inlined_call_operand.vmem [shape: f32[32,128], index: 5, kind: input, shape index: {}]   ;;  %s2416_s8 = inlined_call_operand.vmem [shape: f32[32,32], index: 8, kind: input, shape index: {}]   ;;  %s2417_s7 = inlined_call_operand.vmem [shape: f32[4,32], index: 7, kind: input, shape index: {}]   ;;  %s2418_s2 = inlined_call_operand.vmem [shape: f32[8,4], index: 2, kind: input, shape index: {}]   ;;  %s2419_s10 = inlined_call_operand.vmem [shape: f32[32,32], index: 10, kind: input, shape index: {}]   ;;  %s2420_s9 = inlined_call_operand.vmem [shape: f32[1,32], index: 9, kind: input, shape index: {}]   ;;  %s2421_s11 = inlined_call_operand.vmem [shape: f32[1,32], index: 11, kind: input, shape index: {}]   ;;  %s2422_s12 = inlined_call_operand.vmem [shape: f32[32,10], index: 12, kind: input, shape index: {}]   ;;  %s2423_s13 = inlined_call_operand.vmem [shape: f32[1,10], index: 13, kind: input, shape index: {}]   ;;  %s2424_s14 = inlined_call_operand.vmem [shape: f32[10,1], index: 14, kind: input, shape index: {}]   ;;  %s2425_s15 = inlined_call_operand.<no memory space> [shape: f32[1,1], index: 15, kind: input, shape index: {}]   ;;  %s2426_s16 = inlined_call_operand.vmem [shape: f32[8,1], index: 16, kind: output, shape index: {}]  }
   0x1   :  { %2428 = sst [smem:[#allocation4_spill]] %s2410_s3  ;;  %v65_v5 = vld [vmem:[%s2411_s0] sm:$0xff]  ;;  %1624 = vset.pattern.permute.xlu1 %v1766_v24  ;;  %1625 = vset.pattern.permute.xlu2 %v1766_v24  ;;  %v1915_v31 = vld [vmem:[%s2414_s4 + $0x18] sm:$0xff]  ;;  %v1920_v32 = vld [vmem:[%s2414_s4 + $0x10] sm:$0xff] }
   0x2   :  { %s2429_s23 = sld [smem:[#allocation4_spill]]  ;;  %1626 = vset.pattern.permute.xlu0 %v1766_v24  ;;  %v1907_v29 = vld [vmem:[%s2412_s1] sm:$0xff]  ;;  %155 = vmatpush.msra.mxu1 %v1915_v31  ;;  %v1927_v33 = vld [vmem:[%s2414_s4 + $0x8] sm:$0xff] }
   0x3   :  { %vm128_vm4 = vcmp.gt.s32.totalorder %v1907_v29, 0  ;;  %249 = vmatpush.msra.mxu3 %v1915_v31  ;;  %v1934_v34 = vld [vmem:[%s2414_s4] sm:$0xff]  ;;  %v1569_v40 = vld [vmem:[%s2411_s0 + $0x8] sm:$0xff]  ;;  %vm225_vm7 = vcmp.gt.s32.totalorder %v1907_v29, 1  ;;  %vm326_vm13 = vcmp.gt.s32.totalorder %v1907_v29, 2 }
   0x4   :  { %v129_v30 = vsel %vm128_vm4, 1, %v1766_v24  ;;  %156 = vmatpush.msra.mxu1 %v1920_v32  ;;  %v226_v47 = vsel %vm225_vm7, 1, %v1766_v24  ;;  %vm528_vm4 = vcmp.gt.s32.totalorder %v1907_v29, 4 }
   0x5   :  { %250 = vmatpush.msra.mxu3 %v1920_v32 }
   0x6   :  { %157 = vmatpush.msra.mxu1 %v1927_v33 }
   0x7   :  { %251 = vmatpush.msra.mxu3 %v1927_v33 }
   0x8   :  { %v1856_v0 = vld [vmem:[%s2429_s23 + $0x18] sm:$0xff]  ;;  %v1861_v1 = vld [vmem:[%s2429_s23 + $0x10] sm:$0xff]  ;;  %v1868_v2 = vld [vmem:[%s2429_s23 + $0x8] sm:$0xff]  ;;  %158 = vmatpush.msra.mxu1 %v1934_v34 }
   0x9   :  { %82 = vmatpush.msra.mxu0 %v1856_v0  ;;  %179 = vmatpush.msra.mxu2 %v1856_v0  ;;  %v1875_v3 = vld [vmem:[%s2429_s23] sm:$0xff] }
   0xa   :  { %252 = vmatpush.msra.mxu3 %v1934_v34  ;;  %350 = vmatpush.msrb.mxu1 %v1915_v31 }
   0xb   :  { %83 = vmatpush.msra.mxu0 %v1861_v1  ;;  %180 = vmatpush.msra.mxu2 %v1861_v1 }
   0xc   :  { %451 = vmatpush.msrb.mxu3 %v1915_v31  ;;  %351 = vmatpush.msrb.mxu1 %v1920_v32 }
   0xd   :  { %84 = vmatpush.msra.mxu0 %v1868_v2  ;;  %181 = vmatpush.msra.mxu2 %v1868_v2 }
   0xe   :  { %452 = vmatpush.msrb.mxu3 %v1920_v32  ;;  %352 = vmatpush.msrb.mxu1 %v1927_v33 }
   0xf   :  { %85 = vmatpush.msra.mxu0 %v1875_v3  ;;  %182 = vmatpush.msra.mxu2 %v1875_v3 }
  0x10   :  { %86 = vmatmul.f32.vlgmr.msra.gmra.mxu0 %v1764_v4  ;;  %453 = vmatpush.msrb.mxu3 %v1927_v33 }
  0x11   :  { %381 = vmatpush.msrb.mxu2 %v1856_v0  ;;  %280 = vmatpush.msrb.mxu0 %v1856_v0 }
  0x12   :  { %353 = vmatpush.msrb.mxu1 %v1934_v34  ;;  %454 = vmatpush.msrb.mxu3 %v1934_v34 }
  0x13   :  { %382 = vmatpush.msrb.mxu2 %v1861_v1  ;;  %281 = vmatpush.msrb.mxu0 %v1861_v1 }
  0x15   :  { %383 = vmatpush.msrb.mxu2 %v1868_v2  ;;  %282 = vmatpush.msrb.mxu0 %v1868_v2 }
  0x17   :  { %384 = vmatpush.msrb.mxu2 %v1875_v3  ;;  %283 = vmatpush.msrb.mxu0 %v1875_v3 }
  0x19   :  { %482 = vmatpush.msra.mxu0 %v1856_v0 }
  0x1b   :  { %483 = vmatpush.msra.mxu0 %v1861_v1 }
  0x1d   :  { %484 = vmatpush.msra.mxu0 %v1868_v2 }
  0x1f   :  { %485 = vmatpush.msra.mxu0 %v1875_v3 }
  0x8d   :  { %v87_v6 = vpop.f32.mrf.mxu0 }
  0x8e   :  { %v90_v7 = vadd.f32 %v87_v6, %v65_v5 }
  0x90   :  { %1632 = vtanh.f32 %v90_v7  ;;  %v1567_v9 = vmul.f32 -1.442695, %v90_v7 }
  0x92   :  { %1634 = vpow2.f32 %v1567_v9 }
  0x96   :  { %v1633_v8 = vpop.eup %1632 }
  0x97   :  { %113 = vrot.lane.b32.xlu0 %v1633_v8, %s1765_s17 }
  0x98   :  { %v1635_v10 = vpop.eup %1634 }
  0x99   :  { %v94_v11 = vadd.f32 1.0, %v1635_v10  ;;  %v1573_v10 = vld [vmem:[%s2411_s0 + $0x10] sm:$0xff] }
  0x9b   :  { %1636 = vrcp.f32 %v94_v11  ;;  %v106_v17 = vand.u32 2147483648, %v94_v11  ;;  %vm100_vm1 = vweird.f32 %v94_v11  ;;  %v104_v18 = vand.u32 2147483647, %v94_v11 }
  0x9d   :  { %v107_v20 = vor.u32 1.1754944e-38, %v106_v17  ;;  %vm105_vm3 = vcmp.eq.f32.partialorder %v104_v18, 8.507059e+37 }
  0xa1   :  { %v1637_v12 = vpop.eup %1636 }
  0xa2   :  { %v96_v13 = vmul.f32 %v1637_v12, %v94_v11  ;;  %vm101_vm0 = vweird.f32 %v1637_v12 }
  0xa3   :  { %vm102_vm2 = vmor %vm100_vm1, %vm101_vm0 }
  0xa4   :  { %v97_v14 = vsub.f32 1.0, %v96_v13 }
  0xa6   :  { %v98_v15 = vmul.f32 %v1637_v12, %v97_v14  ;;  %v327_v14 = vsel %vm326_vm13, 1, %v1766_v24 }
  0xa8   :  { %v99_v16 = vadd.f32 %v1637_v12, %v98_v15 }
  0xaa   :  { %v103_v19 = vsel %vm102_vm2, %v1637_v12, %v99_v16 }
  0xab   :  { %v108_v22 = vsel %vm105_vm3, %v107_v20, %v103_v19  ;;  %vm427_vm3 = vcmp.gt.s32.totalorder %v1907_v29, 3 }
  0xac   :  { %v111_v25 = vmul.f32 0.0, %v108_v22 }
 0x109   :  { %v114_v21 = vpop.permute.xlu0 %113 }
 0x10a   :  { %v116_v23 = vmul.f32 %v114_v21, %v108_v22 }
 0x10c   :  { %118 = vrot.lane.b32.xlu0 %v116_v23, %s1765_s17 }
 0x17e   :  { %v119_v26 = vpop.permute.xlu0 %118 }
 0x17f   :  { %v1901_v27 = vadd.f32 %v119_v26, %v111_v25 }
 0x181   :  { %1638 = vtanh.f32 %v1901_v27 }
 0x187   :  { %v1639_v28 = vpop.eup %1638 }
 0x188   :  { %124 = vrot.lane.b32.xlu1 %v1639_v28, %s1765_s17 }
 0x190   :  { %131 = vperm.xlu1 %1624, %v129_v30  }
 0x1fa   :  { %v125_v35 = vpop.permute.xlu1 %124 }
 0x1fb   :  { %v127_v36 = vmul.f32 %v125_v35, %v108_v22 }
 0x202   :  { %v1948_v37 = vpop.permute.xlu1 %131 }
 0x203   :  { %vm133_vm5 = vcmp.eq.s32.totalorder %v1948_v37, 1 }
 0x204   :  { %v134_v38 = vsel %vm133_vm5, %v127_v36, 0.0  ;;  %v164_v60 = vsel %vm133_vm5, %v1901_v27, 0.0 }
 0x205   :  { %139 = vrot.lane.b32.xlu2 %v134_v38, %s1767_s27 }
 0x25f   :  { %v140_v39 = vpop.permute.xlu2 %139 }
 0x260   :  { %1568 = vmatmul.msk.f32.vlgmr.msra.gmra.mxu1 %vm66_vm6, %v140_v39  ;;  %1570 = vmatmul.msk.f32.vlgmr.msra.gmra.mxu2 %vm66_vm6, %v140_v39 }
 0x261   :  { %583 = vmatpush.msra.mxu2 %v1856_v0  ;;  %552 = vmatpush.msra.mxu1 %v1915_v31 }
 0x263   :  { %584 = vmatpush.msra.mxu2 %v1861_v1  ;;  %553 = vmatpush.msra.mxu1 %v1920_v32 }
 0x265   :  { %585 = vmatpush.msra.mxu2 %v1868_v2  ;;  %554 = vmatpush.msra.mxu1 %v1927_v33 }
 0x267   :  { %586 = vmatpush.msra.mxu2 %v1875_v3  ;;  %555 = vmatpush.msra.mxu1 %v1934_v34 }
 0x2e3   :  { %v184_v41 = vpop.f32.mrf.mxu2 }
 0x2e4   :  { %v187_v42 = vadd.f32 %v1569_v40, %v184_v41 }
 0x2e6   :  { %1640 = vtanh.f32 %v187_v42  ;;  %v1571_v44 = vmul.f32 -1.442695, %v187_v42 }
 0x2e8   :  { %1642 = vpow2.f32 %v1571_v44 }
 0x2ec   :  { %v1641_v43 = vpop.eup %1640 }
 0x2ed   :  { %210 = vrot.lane.b32.xlu2 %v1641_v43, %s1765_s17 }
 0x2ee   :  { %v1643_v45 = vpop.eup %1642 }
 0x2ef   :  { %v191_v46 = vadd.f32 1.0, %v1643_v45 }
 0x2f1   :  { %1644 = vrcp.f32 %v191_v46  ;;  %v203_v53 = vand.u32 2147483648, %v191_v46  ;;  %vm197_vm9 = vweird.f32 %v191_v46  ;;  %v201_v54 = vand.u32 2147483647, %v191_v46 }
 0x2f3   :  { %v204_v56 = vor.u32 1.1754944e-38, %v203_v53  ;;  %vm202_vm11 = vcmp.eq.f32.partialorder %v201_v54, 8.507059e+37 }
 0x2f5   :  { %228 = vperm.xlu2 %1625, %v226_v47   ;;  %v1577_v47 = vld [vmem:[%s2411_s0 + $0x18] sm:$0xff] }
 0x2f7   :  { %v1645_v48 = vpop.eup %1644 }
 0x2f8   :  { %v193_v49 = vmul.f32 %v1645_v48, %v191_v46  ;;  %vm198_vm8 = vweird.f32 %v1645_v48 }
 0x2f9   :  { %vm199_vm10 = vmor %vm197_vm9, %vm198_vm8 }
 0x2fa   :  { %v194_v50 = vsub.f32 1.0, %v193_v49 }
 0x2fc   :  { %v195_v51 = vmul.f32 %v1645_v48, %v194_v50 }
 0x2fe   :  { %v196_v52 = vadd.f32 %v1645_v48, %v195_v51 }
 0x300   :  { %v200_v55 = vsel %vm199_vm10, %v1645_v48, %v196_v52 }
 0x301   :  { %v205_v58 = vsel %vm202_vm11, %v204_v56, %v200_v55 }
 0x302   :  { %v208_v61 = vmul.f32 %v205_v58, %v164_v60 }
 0x347   :  { %v211_v57 = vpop.permute.xlu2 %210 }
 0x348   :  { %v213_v59 = vmul.f32 %v211_v57, %v205_v58 }
 0x34a   :  { %215 = vrot.lane.b32.xlu0 %v213_v59, %s1765_s17 }
 0x34f   :  { %v1975_v5 = vpop.permute.xlu2 %228 }
 0x350   :  { %vm230_vm12 = vcmp.eq.s32.totalorder %v1975_v5, 1 }
 0x3bc   :  { %v216_v62 = vpop.permute.xlu0 %215 }
 0x3bd   :  { %v218_v63 = vadd.f32 %v216_v62, %v208_v61 }
 0x3bf   :  { %1646 = vtanh.f32 %v218_v63  ;;  %v259_v36 = vsel %vm230_vm12, %v218_v63, %v164_v60 }
 0x3c5   :  { %v1647_v4 = vpop.eup %1646 }
 0x3c6   :  { %221 = vrot.lane.b32.xlu1 %v1647_v4, %s1765_s17 }
 0x438   :  { %v222_v6 = vpop.permute.xlu1 %221 }
 0x439   :  { %v1977_v7 = vmul.f32 %v222_v6, %v205_v58 }
 0x43b   :  { %v260_v8 = vsel %vm230_vm12, %v1977_v7, %v134_v38 }
 0x43c   :  { %264 = vrot.lane.b32.xlu0 %v260_v8, %s1767_s27 }
 0x4ae   :  { %v265_v9 = vpop.permute.xlu0 %264 }
 0x4af   :  { %1574 = vmatmul.msk.f32.vlgmr.msrb.gmra.mxu0 %vm66_vm6, %v265_v9 }
 0x4b0   :  { %684 = vmatpush.msrb.mxu0 %v1856_v0 }
 0x4b2   :  { %685 = vmatpush.msrb.mxu0 %v1861_v1 }
 0x4b4   :  { %686 = vmatpush.msrb.mxu0 %v1868_v2 }
 0x4b6   :  { %687 = vmatpush.msrb.mxu0 %v1875_v3 }
 0x52c   :  { %v285_v11 = vpop.f32.mrf.mxu0 }
 0x52d   :  { %v288_v12 = vadd.f32 %v1573_v10, %v285_v11 }
 0x52f   :  { %1648 = vtanh.f32 %v288_v12  ;;  %v1575_v15 = vmul.f32 -1.442695, %v288_v12 }
 0x531   :  { %1650 = vpow2.f32 %v1575_v15 }
 0x535   :  { %v1649_v13 = vpop.eup %1648 }
 0x536   :  { %311 = vrot.lane.b32.xlu1 %v1649_v13, %s1765_s17 }
 0x537   :  { %v1651_v16 = vpop.eup %1650 }
 0x538   :  { %v292_v17 = vadd.f32 1.0, %v1651_v16  ;;  %v1581_v16 = vld [vmem:[%s2411_s0 + $0x20] sm:$0xff] }
 0x53a   :  { %1652 = vrcp.f32 %v292_v17  ;;  %v304_v23 = vand.u32 2147483648, %v292_v17  ;;  %vm298_vm15 = vweird.f32 %v292_v17  ;;  %v302_v25 = vand.u32 2147483647, %v292_v17 }
 0x53c   :  { %v305_v27 = vor.u32 1.1754944e-38, %v304_v23  ;;  %vm303_vm1 = vcmp.eq.f32.partialorder %v302_v25, 8.507059e+37 }
 0x53e   :  { %329 = vperm.xlu1 %1624, %v327_v14  }
 0x540   :  { %v1653_v18 = vpop.eup %1652 }
 0x541   :  { %v294_v19 = vmul.f32 %v1653_v18, %v292_v17  ;;  %vm299_vm14 = vweird.f32 %v1653_v18 }
 0x542   :  { %vm300_vm0 = vmor %vm298_vm15, %vm299_vm14 }
 0x543   :  { %v295_v20 = vsub.f32 1.0, %v294_v19 }
 0x545   :  { %v296_v21 = vmul.f32 %v1653_v18, %v295_v20 }
 0x547   :  { %v297_v22 = vadd.f32 %v1653_v18, %v296_v21 }
 0x549   :  { %v301_v26 = vsel %vm300_vm0, %v1653_v18, %v297_v22 }
 0x54a   :  { %v306_v30 = vsel %vm303_vm1, %v305_v27, %v301_v26 }
 0x54b   :  { %v309_v38 = vmul.f32 %v306_v30, %v259_v36 }
 0x5a8   :  { %v312_v28 = vpop.permute.xlu1 %311 }
 0x5a9   :  { %v314_v35 = vmul.f32 %v312_v28, %v306_v30 }
 0x5ab   :  { %316 = vrot.lane.b32.xlu2 %v314_v35, %s1765_s17 }
 0x5b0   :  { %v1999_v42 = vpop.permute.xlu1 %329 }
 0x5b1   :  { %vm331_vm2 = vcmp.eq.s32.totalorder %v1999_v42, 1 }
 0x605   :  { %v317_v39 = vpop.permute.xlu2 %316 }
 0x606   :  { %v319_v40 = vadd.f32 %v317_v39, %v309_v38 }
 0x608   :  { %1654 = vtanh.f32 %v319_v40  ;;  %v360_v4 = vsel %vm331_vm2, %v319_v40, %v259_v36 }
 0x60e   :  { %v1655_v41 = vpop.eup %1654 }
 0x60f   :  { %322 = vrot.lane.b32.xlu0 %v1655_v41, %s1765_s17 }
 0x681   :  { %v323_v43 = vpop.permute.xlu0 %322 }
 0x682   :  { %v2001_v44 = vmul.f32 %v323_v43, %v306_v30 }
 0x684   :  { %v361_v45 = vsel %vm331_vm2, %v2001_v44, %v260_v8 }
 0x685   :  { %365 = vrot.lane.b32.xlu2 %v361_v45, %s1767_s27 }
 0x6df   :  { %v366_v46 = vpop.permute.xlu2 %365 }
 0x6e0   :  { %1578 = vmatmul.msk.f32.vlgmr.msrb.gmra.mxu2 %vm66_vm6, %v366_v46 }
 0x6e1   :  { %785 = vmatpush.msrb.mxu2 %v1856_v0 }
 0x6e3   :  { %786 = vmatpush.msrb.mxu2 %v1861_v1  ;;  %v428_v1 = vsel %vm427_vm3, 1, %v1766_v24  ;;  %vm629_vm3 = vcmp.gt.s32.totalorder %v1907_v29, 5 }
 0x6e5   :  { %787 = vmatpush.msrb.mxu2 %v1868_v2  ;;  %v529_v2 = vsel %vm528_vm4, 1, %v1766_v24 }
 0x6e7   :  { %788 = vmatpush.msrb.mxu2 %v1875_v3 }
 0x763   :  { %v386_v48 = vpop.f32.mrf.mxu2 }
 0x764   :  { %v389_v49 = vadd.f32 %v1577_v47, %v386_v48 }
 0x766   :  { %1656 = vtanh.f32 %v389_v49  ;;  %v1579_v51 = vmul.f32 -1.442695, %v389_v49 }
 0x768   :  { %1658 = vpow2.f32 %v1579_v51 }
 0x76c   :  { %v1657_v50 = vpop.eup %1656 }
 0x76d   :  { %412 = vrot.lane.b32.xlu0 %v1657_v50, %s1765_s17 }
 0x76e   :  { %v1659_v52 = vpop.eup %1658 }
 0x76f   :  { %v393_v0 = vadd.f32 1.0, %v1659_v52 }
 0x771   :  { %1660 = vrcp.f32 %v393_v0  ;;  %v405_v57 = vand.u32 2147483648, %v393_v0  ;;  %vm399_vm8 = vweird.f32 %v393_v0  ;;  %v403_v58 = vand.u32 2147483647, %v393_v0 }
 0x773   :  { %v406_v60 = vor.u32 1.1754944e-38, %v405_v57  ;;  %vm404_vm10 = vcmp.eq.f32.partialorder %v403_v58, 8.507059e+37 }
 0x775   :  { %430 = vperm.xlu0 %1626, %v428_v1   ;;  %v1585_v1 = vld [vmem:[%s2411_s0 + $0x28] sm:$0xff] }
 0x777   :  { %v1661_v3 = vpop.eup %1660 }
 0x778   :  { %v395_v53 = vmul.f32 %v1661_v3, %v393_v0  ;;  %vm400_vm7 = vweird.f32 %v1661_v3 }
 0x779   :  { %vm401_vm9 = vmor %vm399_vm8, %vm400_vm7 }
 0x77a   :  { %v396_v54 = vsub.f32 1.0, %v395_v53 }
 0x77c   :  { %v397_v55 = vmul.f32 %v1661_v3, %v396_v54  ;;  %v630_v54 = vsel %vm629_vm3, 1, %v1766_v24 }
 0x77d   :  { %531 = vperm.xlu0 %1626, %v529_v2  }
 0x77e   :  { %v398_v56 = vadd.f32 %v1661_v3, %v397_v55 }
 0x780   :  { %v402_v59 = vsel %vm401_vm9, %v1661_v3, %v398_v56 }
 0x781   :  { %v407_v62 = vsel %vm404_vm10, %v406_v60, %v402_v59 }
 0x782   :  { %v410_v6 = vmul.f32 %v407_v62, %v360_v4 }
 0x7df   :  { %v413_v61 = vpop.permute.xlu0 %412 }
 0x7e0   :  { %v415_v63 = vmul.f32 %v413_v61, %v407_v62 }
 0x7e2   :  { %417 = vrot.lane.b32.xlu1 %v415_v63, %s1765_s17 }
 0x7e7   :  { %v2025_v11 = vpop.permute.xlu0 %430 }
 0x7e8   :  { %vm432_vm11 = vcmp.eq.s32.totalorder %v2025_v11, 1 }
 0x7ef   :  { %v2043_v49 = vpop.permute.xlu0 %531 }
 0x7f0   :  { %vm533_vm1 = vcmp.eq.s32.totalorder %v2043_v49, 1 }
 0x854   :  { %v418_v8 = vpop.permute.xlu1 %417 }
 0x855   :  { %v420_v9 = vadd.f32 %v418_v8, %v410_v6 }
 0x857   :  { %1662 = vtanh.f32 %v420_v9  ;;  %v461_v43 = vsel %vm432_vm11, %v420_v9, %v360_v4 }
 0x85d   :  { %v1663_v10 = vpop.eup %1662 }
 0x85e   :  { %423 = vrot.lane.b32.xlu2 %v1663_v10, %s1765_s17 }
 0x8b8   :  { %v424_v12 = vpop.permute.xlu2 %423 }
 0x8b9   :  { %v2027_v13 = vmul.f32 %v424_v12, %v407_v62 }
 0x8bb   :  { %v462_v14 = vsel %vm432_vm11, %v2027_v13, %v361_v45 }
 0x8bc   :  { %466 = vrot.lane.b32.xlu1 %v462_v14, %s1767_s27 }
 0x92e   :  { %v467_v15 = vpop.permute.xlu1 %466 }
 0x92f   :  { %1582 = vmatmul.msk.f32.vlgmr.msra.gmra.mxu0 %vm66_vm6, %v467_v15 }
 0x9ac   :  { %v487_v17 = vpop.f32.mrf.mxu0 }
 0x9ad   :  { %v490_v18 = vadd.f32 %v1581_v16, %v487_v17 }
 0x9af   :  { %1664 = vtanh.f32 %v490_v18  ;;  %v1583_v20 = vmul.f32 -1.442695, %v490_v18 }
 0x9b1   :  { %1666 = vpow2.f32 %v1583_v20 }
 0x9b5   :  { %v1665_v19 = vpop.eup %1664 }
 0x9b6   :  { %513 = vrot.lane.b32.xlu2 %v1665_v19, %s1765_s17 }
 0x9b7   :  { %v1667_v21 = vpop.eup %1666 }
 0x9b8   :  { %v494_v22 = vadd.f32 1.0, %v1667_v21 }
 0x9ba   :  { %1668 = vrcp.f32 %v494_v22  ;;  %v506_v30 = vand.u32 2147483648, %v494_v22  ;;  %vm500_vm14 = vweird.f32 %v494_v22  ;;  %v504_v35 = vand.u32 2147483647, %v494_v22 }
 0x9bc   :  { %v507_v38 = vor.u32 1.1754944e-38, %v506_v30  ;;  %vm505_vm0 = vcmp.eq.f32.partialorder %v504_v35, 8.507059e+37 }
 0x9c0   :  { %v1669_v23 = vpop.eup %1668 }
 0x9c1   :  { %v496_v25 = vmul.f32 %v1669_v23, %v494_v22  ;;  %vm501_vm13 = vweird.f32 %v1669_v23 }
 0x9c2   :  { %vm502_vm15 = vmor %vm500_vm14, %vm501_vm13  ;;  %vm730_vm13 = vcmp.gt.s32.totalorder %v1907_v29, 6 }
 0x9c3   :  { %v497_v26 = vsub.f32 1.0, %v496_v25  ;;  %v1589_v25 = vld [vmem:[%s2411_s0 + $0x30] sm:$0xff]  ;;  %v731_v30 = vsel %vm730_vm13, 1, %v1766_v24 }
 0x9c5   :  { %v498_v27 = vmul.f32 %v1669_v23, %v497_v26 }
 0x9c7   :  { %v499_v28 = vadd.f32 %v1669_v23, %v498_v27 }
 0x9c9   :  { %v503_v36 = vsel %vm502_vm15, %v1669_v23, %v499_v28 }
 0x9ca   :  { %v508_v40 = vsel %vm505_vm0, %v507_v38, %v503_v36 }
 0x9cb   :  { %v511_v45 = vmul.f32 %v508_v40, %v461_v43 }
 0xa10   :  { %v514_v39 = vpop.permute.xlu2 %513 }
 0xa11   :  { %v516_v41 = vmul.f32 %v514_v39, %v508_v40 }
 0xa13   :  { %518 = vrot.lane.b32.xlu1 %v516_v41, %s1765_s17 }
 0xa85   :  { %v519_v46 = vpop.permute.xlu1 %518 }
 0xa86   :  { %v521_v47 = vadd.f32 %v519_v46, %v511_v45 }
 0xa88   :  { %1670 = vtanh.f32 %v521_v47 }
 0xa8e   :  { %v1671_v48 = vpop.eup %1670 }
 0xa8f   :  { %524 = vrot.lane.b32.xlu2 %v1671_v48, %s1765_s17 }
 0xae9   :  { %v525_v50 = vpop.permute.xlu2 %524 }
 0xaea   :  { %v2045_v51 = vmul.f32 %v525_v50, %v508_v40 }
 0xaec   :  { %v563_v52 = vsel %vm533_vm1, %v2045_v51, %v462_v14  ;;  %v562_v14 = vsel %vm533_vm1, %v521_v47, %v461_v43 }
 0xaed   :  { %567 = vrot.lane.b32.xlu1 %v563_v52, %s1767_s27 }
 0xb5f   :  { %v568_v0 = vpop.permute.xlu1 %567 }
 0xb60   :  { %1586 = vmatmul.msk.f32.vlgmr.msra.gmra.mxu2 %vm66_vm6, %v568_v0 }
 0xbe3   :  { %v588_v2 = vpop.f32.mrf.mxu2 }
 0xbe4   :  { %v591_v3 = vadd.f32 %v1585_v1, %v588_v2 }
 0xbe6   :  { %1672 = vtanh.f32 %v591_v3  ;;  %v1587_v55 = vmul.f32 -1.442695, %v591_v3 }
 0xbe8   :  { %1674 = vpow2.f32 %v1587_v55 }
 0xbec   :  { %v1673_v53 = vpop.eup %1672 }
 0xbed   :  { %614 = vrot.lane.b32.xlu2 %v1673_v53, %s1765_s17 }
 0xbee   :  { %v1675_v56 = vpop.eup %1674 }
 0xbef   :  { %v595_v57 = vadd.f32 1.0, %v1675_v56 }
 0xbf1   :  { %1676 = vrcp.f32 %v595_v57  ;;  %v607_v63 = vand.u32 2147483648, %v595_v57  ;;  %vm601_vm7 = vweird.f32 %v595_v57  ;;  %v605_v4 = vand.u32 2147483647, %v595_v57 }
 0xbf3   :  { %v608_v8 = vor.u32 1.1754944e-38, %v607_v63  ;;  %vm606_vm9 = vcmp.eq.f32.partialorder %v605_v4, 8.507059e+37 }
 0xbf5   :  { %632 = vperm.xlu2 %1625, %v630_v54  }
 0xbf7   :  { %v1677_v58 = vpop.eup %1676 }
 0xbf8   :  { %v597_v59 = vmul.f32 %v1677_v58, %v595_v57  ;;  %vm602_vm4 = vweird.f32 %v1677_v58 }
 0xbf9   :  { %vm603_vm8 = vmor %vm601_vm7, %vm602_vm4  ;;  %vm831_vm7 = vcmp.gt.s32.totalorder %v1907_v29, 7 }
 0xbfa   :  { %v598_v60 = vsub.f32 1.0, %v597_v59 }
 0xbfc   :  { %v599_v61 = vmul.f32 %v1677_v58, %v598_v60 }
 0xbfe   :  { %v600_v62 = vadd.f32 %v1677_v58, %v599_v61  ;;  %v1593_v61 = vld [vmem:[%s2411_s0 + $0x38] sm:$0xff] }
 0xc00   :  { %v604_v6 = vsel %vm603_vm8, %v1677_v58, %v600_v62 }
 0xc01   :  { %v609_v10 = vsel %vm606_vm9, %v608_v8, %v604_v6  ;;  %v832_v6 = vsel %vm831_vm7, 1, %v1766_v24 }
 0xc02   :  { %v612_v15 = vmul.f32 %v609_v10, %v562_v14 }
 0xc47   :  { %v615_v9 = vpop.permute.xlu2 %614 }
 0xc48   :  { %v617_v12 = vmul.f32 %v615_v9, %v609_v10 }
 0xc4a   :  { %619 = vrot.lane.b32.xlu0 %v617_v12, %s1765_s17 }
 0xc4f   :  { %v2063_v19 = vpop.permute.xlu2 %632 }
 0xc50   :  { %vm634_vm10 = vcmp.eq.s32.totalorder %v2063_v19, 1 }
 0xcbc   :  { %v620_v16 = vpop.permute.xlu0 %619 }
 0xcbd   :  { %v622_v17 = vadd.f32 %v620_v16, %v612_v15 }
 0xcbf   :  { %1678 = vtanh.f32 %v622_v17  ;;  %v663_v2 = vsel %vm634_vm10, %v622_v17, %v562_v14 }
 0xcc5   :  { %v1679_v18 = vpop.eup %1678 }
 0xcc6   :  { %625 = vrot.lane.b32.xlu1 %v1679_v18, %s1765_s17 }
 0xd38   :  { %v626_v20 = vpop.permute.xlu1 %625 }
 0xd39   :  { %v2065_v21 = vmul.f32 %v626_v20, %v609_v10 }
 0xd3b   :  { %v664_v22 = vsel %vm634_vm10, %v2065_v21, %v563_v52 }
 0xd3c   :  { %668 = vrot.lane.b32.xlu0 %v664_v22, %s1767_s27 }
 0xdae   :  { %v669_v23 = vpop.permute.xlu0 %668 }
 0xdaf   :  { %1590 = vmatmul.msk.f32.vlgmr.msrb.gmra.mxu0 %vm66_vm6, %v669_v23 }
 0xe2c   :  { %v689_v26 = vpop.f32.mrf.mxu0 }
 0xe2d   :  { %v692_v27 = vadd.f32 %v1589_v25, %v689_v26 }
 0xe2f   :  { %1680 = vtanh.f32 %v692_v27  ;;  %v1591_v35 = vmul.f32 -1.442695, %v692_v27 }
 0xe31   :  { %1682 = vpow2.f32 %v1591_v35 }
 0xe35   :  { %v1681_v28 = vpop.eup %1680 }
 0xe36   :  { %715 = vrot.lane.b32.xlu1 %v1681_v28, %s1765_s17 }
 0xe37   :  { %v1683_v36 = vpop.eup %1682 }
 0xe38   :  { %v696_v38 = vadd.f32 1.0, %v1683_v36  ;;  %v2115_v36 = vld [vmem:[%s2415_s5 + $0x18] sm:$0xff] }
 0xe39   :  { %889 = vmatpush.msra.mxu0 %v2115_v36  ;;  %1021 = vmatpush.msra.mxu2 %v2115_v36 }
 0xe3a   :  { %1684 = vrcp.f32 %v696_v38  ;;  %v708_v46 = vand.u32 2147483648, %v696_v38  ;;  %vm702_vm15 = vweird.f32 %v696_v38  ;;  %v706_v47 = vand.u32 2147483647, %v696_v38 }
 0xe3c   :  { %v709_v50 = vor.u32 1.1754944e-38, %v708_v46  ;;  %vm707_vm3 = vcmp.eq.f32.partialorder %v706_v47, 8.507059e+37 }
 0xe3e   :  { %733 = vperm.xlu1 %1624, %v731_v30  }
 0xe40   :  { %v1685_v39 = vpop.eup %1684 }
 0xe41   :  { %v698_v40 = vmul.f32 %v1685_v39, %v696_v38  ;;  %vm703_vm14 = vweird.f32 %v1685_v39  ;;  %v2120_v38 = vld [vmem:[%s2415_s5 + $0x10] sm:$0xff] }
 0xe42   :  { %vm704_vm0 = vmor %vm702_vm15, %vm703_vm14  ;;  %890 = vmatpush.msra.mxu0 %v2120_v38  ;;  %1022 = vmatpush.msra.mxu2 %v2120_v38 }
 0xe43   :  { %v699_v41 = vsub.f32 1.0, %v698_v40  ;;  %v2134_v40 = vld [vmem:[%s2415_s5] sm:$0xff] }
 0xe45   :  { %v700_v43 = vmul.f32 %v1685_v39, %v699_v41 }
 0xe47   :  { %v701_v45 = vadd.f32 %v1685_v39, %v700_v43 }
 0xe49   :  { %v705_v48 = vsel %vm704_vm0, %v1685_v39, %v701_v45  ;;  %v2127_v39 = vld [vmem:[%s2415_s5 + $0x8] sm:$0xff] }
 0xe4a   :  { %v710_v0 = vsel %vm707_vm3, %v709_v50, %v705_v48  ;;  %891 = vmatpush.msra.mxu0 %v2127_v39  ;;  %1023 = vmatpush.msra.mxu2 %v2127_v39  ;;  %v2165_v48 = vld [vmem:[%s2413_s6] ss:$0 sm:$0xff]  ;;  %v160_v50 = vpop.f32.mrf.mxu1 }
 0xe4b   :  { %v713_v3 = vmul.f32 %v710_v0, %v663_v2 }
 0xe4c   :  { %892 = vmatpush.msra.mxu0 %v2134_v40  ;;  %1024 = vmatpush.msra.mxu2 %v2134_v40 }
 0xe4e   :  { %1153 = vmatpush.msrb.mxu0 %v2115_v36 }
 0xe50   :  { %1154 = vmatpush.msrb.mxu0 %v2120_v38 }
 0xe52   :  { %1155 = vmatpush.msrb.mxu0 %v2127_v39 }
 0xe54   :  { %1156 = vmatpush.msrb.mxu0 %v2134_v40 }
 0xea8   :  { %v716_v52 = vpop.permute.xlu1 %715 }
 0xea9   :  { %v718_v1 = vmul.f32 %v716_v52, %v710_v0  ;;  %v161_v52 = vadd.f32 %v2165_v48, %v160_v50 }
 0xeab   :  { %720 = vrot.lane.b32.xlu2 %v718_v1, %s1765_s17 }
 0xeb0   :  { %v2083_v56 = vpop.permute.xlu1 %733 }
 0xeb1   :  { %vm735_vm4 = vcmp.eq.s32.totalorder %v2083_v56, 1  ;;  %v1402_v56 = vld [vmem:[%s2416_s8 + $0x10] sm:$0xff] }
 0xf05   :  { %v721_v53 = vpop.permute.xlu2 %720 }
 0xf06   :  { %v723_v54 = vadd.f32 %v721_v53, %v713_v3  ;;  %v332_v3 = vsel %vm331_vm2, %v2001_v44, 0.0 }
 0xf08   :  { %1686 = vtanh.f32 %v723_v54  ;;  %v2105_v26 = vsel %vm735_vm4, %v723_v54, %v663_v2 }
 0xf0e   :  { %v1687_v55 = vpop.eup %1686 }
 0xf0f   :  { %726 = vrot.lane.b32.xlu0 %v1687_v55, %s1765_s17 }
 0xf81   :  { %v727_v57 = vpop.permute.xlu0 %726 }
 0xf82   :  { %v2085_v58 = vmul.f32 %v727_v57, %v710_v0 }
 0xf84   :  { %v2091_v59 = vsel %vm735_vm4, %v2085_v58, %v664_v22  ;;  %v736_v53 = vsel %vm735_vm4, %v2085_v58, 0.0 }
 0xf85   :  { %769 = vrot.lane.b32.xlu2 %v2091_v59, %s1767_s27 }
 0xfdf   :  { %v770_v60 = vpop.permute.xlu2 %769 }
 0xfe0   :  { %1594 = vmatmul.msk.f32.vlgmr.msrb.gmra.mxu2 %vm66_vm6, %v770_v60 }
 0xfe1   :  { %1285 = vmatpush.msrb.mxu2 %v2115_v36 }
 0xfe3   :  { %1286 = vmatpush.msrb.mxu2 %v2120_v38 }
 0xfe5   :  { %1287 = vmatpush.msrb.mxu2 %v2127_v39 }
 0xfe7   :  { %1288 = vmatpush.msrb.mxu2 %v2134_v40 }
0x1063   :  { %v790_v62 = vpop.f32.mrf.mxu2 }
0x1064   :  { %v793_v63 = vadd.f32 %v1593_v61, %v790_v62 }
0x1066   :  { %1688 = vtanh.f32 %v793_v63  ;;  %v1595_v8 = vmul.f32 -1.442695, %v793_v63 }
0x1068   :  { %1690 = vpow2.f32 %v1595_v8 }
0x106c   :  { %v1689_v4 = vpop.eup %1688 }
0x106d   :  { %816 = vrot.lane.b32.xlu0 %v1689_v4, %s1765_s17 }
0x106e   :  { %v1691_v9 = vpop.eup %1690 }
0x106f   :  { %v797_v10 = vadd.f32 1.0, %v1691_v9 }
0x1071   :  { %1692 = vrcp.f32 %v797_v10  ;;  %v809_v18 = vand.u32 2147483648, %v797_v10  ;;  %vm803_vm9 = vweird.f32 %v797_v10  ;;  %v807_v20 = vand.u32 2147483647, %v797_v10 }
0x1073   :  { %v810_v29 = vor.u32 1.1754944e-38, %v809_v18  ;;  %vm808_vm14 = vcmp.eq.f32.partialorder %v807_v20, 8.507059e+37 }
0x1075   :  { %834 = vperm.xlu0 %1626, %v832_v6  }
0x1077   :  { %v1693_v12 = vpop.eup %1692 }
0x1078   :  { %v799_v14 = vmul.f32 %v1693_v12, %v797_v10  ;;  %vm804_vm8 = vweird.f32 %v1693_v12 }
0x1079   :  { %vm805_vm13 = vmor %vm803_vm9, %vm804_vm8 }
0x107a   :  { %v800_v15 = vsub.f32 1.0, %v799_v14  ;;  %v534_v14 = vsel %vm533_vm1, %v2045_v51, 0.0 }
0x107c   :  { %v801_v16 = vmul.f32 %v1693_v12, %v800_v15 }
0x107e   :  { %v802_v17 = vadd.f32 %v1693_v12, %v801_v16 }
0x1080   :  { %v806_v22 = vsel %vm805_vm13, %v1693_v12, %v802_v17 }
0x1081   :  { %v811_v23 = vsel %vm808_vm14, %v810_v29, %v806_v22  ;;  %v231_v29 = vsel %vm230_vm12, %v1977_v7, 0.0 }
0x1082   :  { %v814_v27 = vmul.f32 %v811_v23, %v2105_v26 }
0x10df   :  { %v817_v24 = vpop.permute.xlu0 %816 }
0x10e0   :  { %v819_v25 = vmul.f32 %v817_v24, %v811_v23 }
0x10e2   :  { %821 = vrot.lane.b32.xlu1 %v819_v25, %s1765_s17 }
0x10e7   :  { %v2148_v41 = vpop.permute.xlu0 %834 }
0x10e8   :  { %vm836_vm15 = vcmp.eq.s32.totalorder %v2148_v41, 1  ;;  %v1465_v41 = vld [vmem:[%s2419_s10 + $0x10] sm:$0xff] }
0x1154   :  { %v822_v28 = vpop.permute.xlu1 %821 }
0x1155   :  { %v2108_v30 = vadd.f32 %v822_v28, %v814_v27 }
0x1157   :  { %1694 = vtanh.f32 %v2108_v30  ;;  %v2191_v15 = vsel %vm836_vm15, %v2108_v30, %v2105_v26 }
0x115d   :  { %v1695_v35 = vpop.eup %1694 }
0x115e   :  { %827 = vrot.lane.b32.xlu2 %v1695_v35, %s1765_s17 }
0x11b8   :  { %v828_v43 = vpop.permute.xlu2 %827 }
0x11b9   :  { %v2150_v45 = vmul.f32 %v828_v43, %v811_v23 }
0x11bb   :  { %v2157_v46 = vsel %vm836_vm15, %v2150_v45, %v2091_v59  ;;  %v837_v5 = vsel %vm836_vm15, %v2150_v45, 0.0 }
0x11bc   :  { %873 = vrot.lane.b32.xlu1 %v2157_v46, %s1767_s27 }
0x122e   :  { %v874_v47 = vpop.permute.xlu1 %873 }
0x122f   :  { %1597 = vmatmul.msk.f32.vlgmr.msra.gmra.mxu0 %vm66_vm6, %v874_v47 }
0x12ac   :  { %v894_v0 = vpop.f32.mrf.mxu0 }
0x12ad   :  { %v897_v1 = vadd.f32 %v894_v0, %v161_v52 }
0x12af   :  { %1696 = vtanh.f32 %v897_v1  ;;  %v1598_v54 = vmul.f32 -1.442695, %v897_v1 }
0x12b1   :  { %1698 = vpow2.f32 %v1598_v54 }
0x12b5   :  { %v1697_v2 = vpop.eup %1696 }
0x12b6   :  { %920 = vrot.lane.b32.xlu2 %v1697_v2, %s1765_s17 }
0x12b7   :  { %v1699_v55 = vpop.eup %1698 }
0x12b8   :  { %v901_v57 = vadd.f32 1.0, %v1699_v55 }
0x12ba   :  { %1700 = vrcp.f32 %v901_v57  ;;  %v913_v44 = vand.u32 2147483648, %v901_v57  ;;  %vm907_vm3 = vweird.f32 %v901_v57  ;;  %v911_v4 = vand.u32 2147483647, %v901_v57 }
0x12bc   :  { %v914_v8 = vor.u32 1.1754944e-38, %v913_v44  ;;  %vm912_vm8 = vcmp.eq.f32.partialorder %v911_v4, 8.507059e+37 }
0x12be   :  { %334 = vrot.lane.b32.xlu2 %v332_v3, %s1767_s27 }
0x12c0   :  { %v1701_v59 = vpop.eup %1700 }
0x12c1   :  { %v903_v60 = vmul.f32 %v1701_v59, %v901_v57  ;;  %vm908_vm0 = vweird.f32 %v1701_v59 }
0x12c2   :  { %vm909_vm7 = vmor %vm907_vm3, %vm908_vm0 }
0x12c3   :  { %v904_v61 = vsub.f32 1.0, %v903_v60 }
0x12c5   :  { %v905_v62 = vmul.f32 %v1701_v59, %v904_v61 }
0x12c6   :  { %738 = vrot.lane.b32.xlu2 %v736_v53, %s1767_s27 }
0x12c7   :  { %v906_v63 = vadd.f32 %v1701_v59, %v905_v62 }
0x12c9   :  { %v910_v6 = vsel %vm909_vm7, %v1701_v59, %v906_v63 }
0x12ca   :  { %v915_v9 = vsel %vm912_vm8, %v914_v8, %v910_v6 }
0x12cb   :  { %v918_v16 = vmul.f32 %v915_v9, %v2191_v15 }
0x1310   :  { %v921_v58 = vpop.permute.xlu2 %920 }
0x1311   :  { %v923_v10 = vmul.f32 %v921_v58, %v915_v9 }
0x1313   :  { %925 = vrot.lane.b32.xlu0 %v923_v10, %s1765_s17 }
0x1318   :  { %v335_v12 = vpop.permute.xlu2 %334 }
0x1319   :  { %1576 = vmatmul.msk.f32.vlgmr.msrb.gmra.mxu1 %vm66_vm6, %v335_v12 }
0x131a   :  { %754 = vmatpush.msrb.mxu1 %v1915_v31 }
0x131b   :  { %536 = vrot.lane.b32.xlu0 %v534_v14, %s1767_s27 }
0x131c   :  { %755 = vmatpush.msrb.mxu1 %v1920_v32 }
0x131e   :  { %756 = vmatpush.msrb.mxu1 %v1927_v33 }
0x1320   :  { %757 = vmatpush.msrb.mxu1 %v1934_v34  ;;  %v739_v22 = vpop.permute.xlu2 %738 }
0x1385   :  { %v926_v17 = vpop.permute.xlu0 %925 }
0x1386   :  { %v2194_v51 = vadd.f32 %v926_v17, %v918_v16 }
0x1388   :  { %1702 = vtanh.f32 %v2194_v51  ;;  %v935_v61 = vsel %vm133_vm5, %v2194_v51, %v2191_v15  ;;  %v433_v15 = vsel %vm432_vm11, %v2027_v13, 0.0 }
0x138d   :  { %v537_v18 = vpop.permute.xlu0 %536 }
0x138e   :  { %v1703_v20 = vpop.eup %1702  ;;  %1584 = vmatmul.msk.f32.vlgmr.msra.gmra.mxu1 %vm66_vm6, %v537_v18 }
0x138f   :  { %931 = vrot.lane.b32.xlu1 %v1703_v20, %s1765_s17  ;;  %955 = vmatpush.msra.mxu1 %v2115_v36 }
0x1391   :  { %956 = vmatpush.msra.mxu1 %v2120_v38 }
0x1393   :  { %957 = vmatpush.msra.mxu1 %v2127_v39 }
0x1395   :  { %958 = vmatpush.msra.mxu1 %v2134_v40 }
0x1396   :  { %1592 = vmatmul.msk.f32.vlgmr.msrb.gmra.mxu1 %vm66_vm6, %v739_v22  ;;  %v355_v27 = vpop.f32.mrf.mxu1 }
0x1397   :  { %233 = vrot.lane.b32.xlu1 %v231_v29, %s1767_s27  ;;  %1219 = vmatpush.msrb.mxu1 %v2115_v36  ;;  %v356_v37 = vadd.f32 %v2165_v48, %v355_v27 }
0x1399   :  { %1220 = vmatpush.msrb.mxu1 %v2120_v38 }
0x139b   :  { %1221 = vmatpush.msrb.mxu1 %v2127_v39 }
0x139d   :  { %1222 = vmatpush.msrb.mxu1 %v2134_v40 }
0x1401   :  { %v932_v24 = vpop.permute.xlu1 %931 }
0x1402   :  { %v934_v23 = vmul.f32 %v932_v24, %v915_v9 }
0x1404   :  { %v936_v25 = vsel %vm133_vm5, %v934_v23, %v2157_v46 }
0x1405   :  { %939 = vrot.lane.b32.xlu0 %v936_v25, %s1767_s27 }
0x1409   :  { %v234_v26 = vpop.permute.xlu1 %233 }
0x140a   :  { %1572 = vmatmul.msk.f32.vlgmr.msra.gmra.mxu3 %vm66_vm6, %v234_v26 }
0x140b   :  { %653 = vmatpush.msra.mxu3 %v1915_v31  ;;  %v2222_v28 = vpop.f32.mrf.mxu1 }
0x140c   :  { %v558_v42 = vadd.f32 %v2165_v48, %v2222_v28 }
0x140d   :  { %654 = vmatpush.msra.mxu3 %v1920_v32 }
0x140f   :  { %655 = vmatpush.msra.mxu3 %v1927_v33 }
0x1411   :  { %656 = vmatpush.msra.mxu3 %v1934_v34 }
0x1413   :  { %v2224_v30 = vpop.f32.mrf.mxu1 }
0x1414   :  { %v760_v49 = vadd.f32 %v2165_v48, %v2224_v30 }
0x1477   :  { %v940_v7 = vpop.permute.xlu0 %939 }
0x1478   :  { %1599 = vmatmul.msk.f32.vlgmr.msra.gmra.mxu1 %vm66_vm6, %v940_v7 }
0x148d   :  { %v254_v35 = vpop.f32.mrf.mxu3 }
0x148e   :  { %v255_v43 = vadd.f32 %v2165_v48, %v254_v35 }
0x14f5   :  { %v960_v46 = vpop.f32.mrf.mxu1 }
0x14f6   :  { %v963_v47 = vadd.f32 %v960_v46, %v255_v43  ;;  %v635_v46 = vsel %vm634_vm10, %v2065_v21, 0.0  ;;  %v1763_v21 = vld [vmem:[%s2414_s4] sm:$0xff] }
0x14f8   :  { %1704 = vtanh.f32 %v963_v47  ;;  %v1600_v32 = vmul.f32 -1.442695, %v963_v47  ;;  %v1760_v47 = vld [vmem:[%s2414_s4 + $0x18] sm:$0xff] }
0x14fa   :  { %1706 = vpow2.f32 %v1600_v32  ;;  %v1762_v32 = vld [vmem:[%s2414_s4 + $0x8] sm:$0xff] }
0x14fe   :  { %v1705_v31 = vpop.eup %1704 }
0x14ff   :  { %986 = vrot.lane.b32.xlu1 %v1705_v31, %s1765_s17  ;;  %v1761_v31 = vld [vmem:[%s2414_s4 + $0x10] sm:$0xff] }
0x1500   :  { %v1707_v33 = vpop.eup %1706 }
0x1501   :  { %v967_v34 = vadd.f32 1.0, %v1707_v33 }
0x1503   :  { %1708 = vrcp.f32 %v967_v34  ;;  %v979_v3 = vand.u32 2147483648, %v967_v34  ;;  %vm973_vm13 = vweird.f32 %v967_v34  ;;  %v977_v53 = vand.u32 2147483647, %v967_v34 }
0x1505   :  { %v980_v55 = vor.u32 1.1754944e-38, %v979_v3  ;;  %vm978_vm0 = vcmp.eq.f32.partialorder %v977_v53, 8.507059e+37 }
0x1509   :  { %v1709_v50 = vpop.eup %1708 }
0x150a   :  { %v969_v52 = vmul.f32 %v1709_v50, %v967_v34  ;;  %vm974_vm9 = vweird.f32 %v1709_v50 }
0x150b   :  { %vm975_vm14 = vmor %vm973_vm13, %vm974_vm9 }
0x150c   :  { %v970_v0 = vsub.f32 1.0, %v969_v52 }
0x150e   :  { %v971_v1 = vmul.f32 %v1709_v50, %v970_v0 }
0x1510   :  { %v972_v2 = vadd.f32 %v1709_v50, %v971_v1 }
0x1512   :  { %v976_v54 = vsel %vm975_vm14, %v1709_v50, %v972_v2 }
0x1513   :  { %v981_v59 = vsel %vm978_vm0, %v980_v55, %v976_v54 }
0x1514   :  { %v984_v62 = vmul.f32 %v981_v59, %v935_v61 }
0x1571   :  { %v987_v57 = vpop.permute.xlu1 %986 }
0x1572   :  { %v989_v60 = vmul.f32 %v987_v57, %v981_v59 }
0x1574   :  { %991 = vrot.lane.b32.xlu2 %v989_v60, %s1765_s17 }
0x15ce   :  { %v992_v63 = vpop.permute.xlu2 %991 }
0x15cf   :  { %v994_v44 = vadd.f32 %v992_v63, %v984_v62 }
0x15d1   :  { %1710 = vtanh.f32 %v994_v44  ;;  %v1001_v33 = vsel %vm230_vm12, %v994_v44, %v935_v61 }
0x15d7   :  { %v1711_v4 = vpop.eup %1710 }
0x15d8   :  { %997 = vrot.lane.b32.xlu0 %v1711_v4, %s1765_s17 }
0x164a   :  { %v998_v6 = vpop.permute.xlu0 %997 }
0x164b   :  { %v1000_v8 = vmul.f32 %v998_v6, %v981_v59 }
0x164d   :  { %v2236_v58 = vsel %vm230_vm12, %v1000_v8, %v936_v25 }
0x164e   :  { %1005 = vrot.lane.b32.xlu1 %v2236_v58, %s1767_s27 }
0x16c0   :  { %v1006_v9 = vpop.permute.xlu1 %1005 }
0x16c1   :  { %1601 = vmatmul.msk.f32.vlgmr.msra.gmra.mxu2 %vm66_vm6, %v1006_v9 }
0x1744   :  { %v1026_v10 = vpop.f32.mrf.mxu2 }
0x1745   :  { %v1029_v12 = vadd.f32 %v1026_v10, %v356_v37 }
0x1747   :  { %1712 = vtanh.f32 %v1029_v12  ;;  %v1602_v16 = vmul.f32 -1.442695, %v1029_v12 }
0x1749   :  { %1714 = vpow2.f32 %v1602_v16 }
0x174d   :  { %v1713_v14 = vpop.eup %1712 }
0x174e   :  { %1052 = vrot.lane.b32.xlu2 %v1713_v14, %s1765_s17 }
0x174f   :  { %v1715_v17 = vpop.eup %1714 }
0x1750   :  { %v1033_v51 = vadd.f32 1.0, %v1715_v17 }
0x1752   :  { %1716 = vrcp.f32 %v1033_v51  ;;  %v1045_v23 = vand.u32 2147483648, %v1033_v51  ;;  %vm1039_vm3 = vweird.f32 %v1033_v51  ;;  %v1043_v25 = vand.u32 2147483647, %v1033_v51 }
0x1754   :  { %v1046_v7 = vor.u32 1.1754944e-38, %v1045_v23  ;;  %vm1044_vm8 = vcmp.eq.f32.partialorder %v1043_v25, 8.507059e+37 }
0x1756   :  { %435 = vrot.lane.b32.xlu2 %v433_v15, %s1767_s27 }
0x1758   :  { %v1717_v18 = vpop.eup %1716 }
0x1759   :  { %v1035_v20 = vmul.f32 %v1717_v18, %v1033_v51  ;;  %vm1040_vm5 = vweird.f32 %v1717_v18 }
0x175a   :  { %vm1041_vm7 = vmor %vm1039_vm3, %vm1040_vm5 }
0x175b   :  { %v1036_v22 = vsub.f32 1.0, %v1035_v20 }
0x175d   :  { %v1037_v29 = vmul.f32 %v1717_v18, %v1036_v22 }
0x175f   :  { %v1038_v24 = vadd.f32 %v1717_v18, %v1037_v29 }
0x1761   :  { %v1042_v26 = vsel %vm1041_vm7, %v1717_v18, %v1038_v24 }
0x1762   :  { %v1047_v27 = vsel %vm1044_vm8, %v1046_v7, %v1042_v26 }
0x1763   :  { %v1050_v34 = vmul.f32 %v1047_v27, %v1001_v33 }
0x17a8   :  { %v1053_v13 = vpop.permute.xlu2 %1052 }
0x17a9   :  { %v1055_v35 = vmul.f32 %v1053_v13, %v1047_v27 }
0x17ab   :  { %1057 = vrot.lane.b32.xlu0 %v1055_v35, %s1765_s17 }
0x17b0   :  { %v436_v43 = vpop.permute.xlu2 %435 }
0x17b1   :  { %1580 = vmatmul.msk.f32.vlgmr.msrb.gmra.mxu3 %vm66_vm6, %v436_v43 }
0x17b2   :  { %855 = vmatpush.msrb.mxu3 %v1760_v47 }
0x17b3   :  { %637 = vrot.lane.b32.xlu0 %v635_v46, %s1767_s27 }
0x17b4   :  { %856 = vmatpush.msrb.mxu3 %v1761_v31 }
0x17b6   :  { %857 = vmatpush.msrb.mxu3 %v1762_v32 }
0x17b8   :  { %858 = vmatpush.msrb.mxu3 %v1763_v21 }
0x181d   :  { %v1058_v50 = vpop.permute.xlu0 %1057 }
0x181e   :  { %v1060_v52 = vadd.f32 %v1058_v50, %v1050_v34 }
0x1820   :  { %1718 = vtanh.f32 %v1060_v52  ;;  %v1067_v16 = vsel %vm331_vm2, %v1060_v52, %v1001_v33 }
0x1825   :  { %v638_v0 = vpop.permute.xlu0 %637 }
0x1826   :  { %v1719_v1 = vpop.eup %1718  ;;  %1588 = vmatmul.msk.f32.vlgmr.msra.gmra.mxu3 %vm66_vm6, %v638_v0 }
0x1827   :  { %1063 = vrot.lane.b32.xlu1 %v1719_v1, %s1765_s17  ;;  %1087 = vmatpush.msra.mxu3 %v2115_v36 }
0x1829   :  { %1088 = vmatpush.msra.mxu3 %v2120_v38 }
0x182b   :  { %1089 = vmatpush.msra.mxu3 %v2127_v39 }
0x182d   :  { %1090 = vmatpush.msra.mxu3 %v2134_v40 }
0x182f   :  { %839 = vrot.lane.b32.xlu1 %v837_v5, %s1767_s27 }
0x1834   :  { %v456_v55 = vpop.f32.mrf.mxu3 }
0x1835   :  { %v457_v60 = vadd.f32 %v2165_v48, %v456_v55 }
0x1899   :  { %v1064_v2 = vpop.permute.xlu1 %1063 }
0x189a   :  { %v1066_v3 = vmul.f32 %v1064_v2, %v1047_v27 }
0x189c   :  { %v1068_v53 = vsel %vm331_vm2, %v1066_v3, %v2236_v58 }
0x189d   :  { %1071 = vrot.lane.b32.xlu2 %v1068_v53, %s1767_s27 }
0x18a1   :  { %v840_v54 = vpop.permute.xlu1 %839 }
0x18a2   :  { %1596 = vmatmul.msk.f32.vlgmr.msrb.gmra.mxu3 %vm66_vm6, %v840_v54 }
0x18a3   :  { %1351 = vmatpush.msrb.mxu3 %v2115_v36 }
0x18a5   :  { %1352 = vmatpush.msrb.mxu3 %v2120_v38 }
0x18a7   :  { %1353 = vmatpush.msrb.mxu3 %v2127_v39 }
0x18a9   :  { %1354 = vmatpush.msrb.mxu3 %v2134_v40  ;;  %v2287_v57 = vpop.f32.mrf.mxu3 }
0x18aa   :  { %v659_v11 = vadd.f32 %v2165_v48, %v2287_v57 }
0x18f7   :  { %v1072_v45 = vpop.permute.xlu2 %1071 }
0x18f8   :  { %1603 = vmatmul.msk.f32.vlgmr.msra.gmra.mxu3 %vm66_vm6, %v1072_v45 }
0x1925   :  { %v2289_v59 = vpop.f32.mrf.mxu3 }
0x1926   :  { %v861_v19 = vadd.f32 %v2165_v48, %v2289_v59 }
0x197b   :  { %v1092_v61 = vpop.f32.mrf.mxu3 }
0x197c   :  { %v1095_v62 = vadd.f32 %v1092_v61, %v457_v60 }
0x197e   :  { %1720 = vtanh.f32 %v1095_v62  ;;  %v1604_v38 = vmul.f32 -1.442695, %v1095_v62 }
0x1980   :  { %1722 = vpow2.f32 %v1604_v38 }
0x1984   :  { %v1721_v36 = vpop.eup %1720 }
0x1985   :  { %1118 = vrot.lane.b32.xlu0 %v1721_v36, %s1765_s17 }
0x1986   :  { %v1723_v39 = vpop.eup %1722 }
0x1987   :  { %v1099_v40 = vadd.f32 1.0, %v1723_v39 }
0x1989   :  { %1724 = vrcp.f32 %v1099_v40  ;;  %v1111_v58 = vand.u32 2147483648, %v1099_v40  ;;  %vm1105_vm9 = vweird.f32 %v1099_v40  ;;  %v1109_v9 = vand.u32 2147483647, %v1099_v40 }
0x198b   :  { %v1112_v10 = vor.u32 1.1754944e-38, %v1111_v58  ;;  %vm1110_vm14 = vcmp.eq.f32.partialorder %v1109_v9, 8.507059e+37 }
0x198f   :  { %v1725_v63 = vpop.eup %1724 }
0x1990   :  { %v1101_v44 = vmul.f32 %v1725_v63, %v1099_v40  ;;  %vm1106_vm12 = vweird.f32 %v1725_v63 }
0x1991   :  { %vm1107_vm13 = vmor %vm1105_vm9, %vm1106_vm12 }
0x1992   :  { %v1102_v4 = vsub.f32 1.0, %v1101_v44 }
0x1994   :  { %v1103_v6 = vmul.f32 %v1725_v63, %v1102_v4 }
0x1996   :  { %v1104_v8 = vadd.f32 %v1725_v63, %v1103_v6 }
0x1998   :  { %v1108_v37 = vsel %vm1107_vm13, %v1725_v63, %v1104_v8 }
0x1999   :  { %v1113_v14 = vsel %vm1110_vm14, %v1112_v10, %v1108_v37 }
0x199a   :  { %v1116_v17 = vmul.f32 %v1113_v14, %v1067_v16 }
0x19f7   :  { %v1119_v12 = vpop.permute.xlu0 %1118 }
0x19f8   :  { %v1121_v15 = vmul.f32 %v1119_v12, %v1113_v14 }
0x19fa   :  { %1123 = vrot.lane.b32.xlu1 %v1121_v15, %s1765_s17 }
0x1a6c   :  { %v1124_v51 = vpop.permute.xlu1 %1123 }
0x1a6d   :  { %v1126_v18 = vadd.f32 %v1124_v51, %v1116_v17 }
0x1a6f   :  { %1726 = vtanh.f32 %v1126_v18  ;;  %v1133_v1 = vsel %vm432_vm11, %v1126_v18, %v1067_v16 }
0x1a75   :  { %v1727_v20 = vpop.eup %1726 }
0x1a76   :  { %1129 = vrot.lane.b32.xlu2 %v1727_v20, %s1765_s17 }
0x1ad0   :  { %v1130_v22 = vpop.permute.xlu2 %1129 }
0x1ad1   :  { %v1132_v29 = vmul.f32 %v1130_v22, %v1113_v14 }
0x1ad3   :  { %v1134_v24 = vsel %vm432_vm11, %v1132_v29, %v1068_v53 }
0x1ad4   :  { %1137 = vrot.lane.b32.xlu0 %v1134_v24, %s1767_s27 }
0x1b46   :  { %v1138_v23 = vpop.permute.xlu0 %1137 }
0x1b47   :  { %1605 = vmatmul.msk.f32.vlgmr.msrb.gmra.mxu0 %vm66_vm6, %v1138_v23 }
0x1bc4   :  { %v1158_v25 = vpop.f32.mrf.mxu0 }
0x1bc5   :  { %v1161_v26 = vadd.f32 %v1158_v25, %v558_v42 }
0x1bc7   :  { %1728 = vtanh.f32 %v1161_v26  ;;  %v1606_v13 = vmul.f32 -1.442695, %v1161_v26 }
0x1bc9   :  { %1730 = vpow2.f32 %v1606_v13 }
0x1bcd   :  { %v1729_v7 = vpop.eup %1728 }
0x1bce   :  { %1184 = vrot.lane.b32.xlu1 %v1729_v7, %s1765_s17 }
0x1bcf   :  { %v1731_v27 = vpop.eup %1730 }
0x1bd0   :  { %v1165_v35 = vadd.f32 1.0, %v1731_v27 }
0x1bd2   :  { %1732 = vrcp.f32 %v1165_v35  ;;  %v1177_v21 = vand.u32 2147483648, %v1165_v35  ;;  %vm1171_vm0 = vweird.f32 %v1165_v35  ;;  %v1175_v28 = vand.u32 2147483647, %v1165_v35 }
0x1bd4   :  { %v1178_v34 = vor.u32 1.1754944e-38, %v1177_v21  ;;  %vm1176_vm3 = vcmp.eq.f32.partialorder %v1175_v28, 8.507059e+37 }
0x1bd8   :  { %v1733_v43 = vpop.eup %1732 }
0x1bd9   :  { %v1167_v46 = vmul.f32 %v1733_v43, %v1165_v35  ;;  %vm1172_vm2 = vweird.f32 %v1733_v43 }
0x1bda   :  { %vm1173_vm5 = vmor %vm1171_vm0, %vm1172_vm2 }
0x1bdb   :  { %v1168_v47 = vsub.f32 1.0, %v1167_v46 }
0x1bdd   :  { %v1169_v31 = vmul.f32 %v1733_v43, %v1168_v47 }
0x1bdf   :  { %v1170_v32 = vadd.f32 %v1733_v43, %v1169_v31 }
0x1be1   :  { %v1174_v33 = vsel %vm1173_vm5, %v1733_v43, %v1170_v32 }
0x1be2   :  { %v1179_v52 = vsel %vm1176_vm3, %v1178_v34, %v1174_v33  ;;  %vm1433_vm3 = vcmask 1043456  }
0x1be3   :  { %v1182_v5 = vmul.f32 %v1179_v52, %v1133_v1 }
0x1c40   :  { %v1185_v50 = vpop.permute.xlu1 %1184 }
0x1c41   :  { %v1187_v0 = vmul.f32 %v1185_v50, %v1179_v52 }
0x1c43   :  { %1189 = vrot.lane.b32.xlu2 %v1187_v0, %s1765_s17 }
0x1c9d   :  { %v1190_v2 = vpop.permute.xlu2 %1189 }
0x1c9e   :  { %v1192_v3 = vadd.f32 %v1190_v2, %v1182_v5 }
0x1ca0   :  { %1734 = vtanh.f32 %v1192_v3  ;;  %v1199_v15 = vsel %vm533_vm1, %v1192_v3, %v1133_v1 }
0x1ca6   :  { %v1735_v53 = vpop.eup %1734 }
0x1ca7   :  { %1195 = vrot.lane.b32.xlu0 %v1735_v53, %s1765_s17 }
0x1d19   :  { %v1196_v54 = vpop.permute.xlu0 %1195 }
0x1d1a   :  { %v1198_v45 = vmul.f32 %v1196_v54, %v1179_v52 }
0x1d1c   :  { %v1200_v55 = vsel %vm533_vm1, %v1198_v45, %v1134_v24 }
0x1d1d   :  { %1203 = vrot.lane.b32.xlu1 %v1200_v55, %s1767_s27 }
0x1d8f   :  { %v1204_v60 = vpop.permute.xlu1 %1203 }
0x1d90   :  { %1607 = vmatmul.msk.f32.vlgmr.msrb.gmra.mxu1 %vm66_vm6, %v1204_v60 }
0x1e0d   :  { %v1224_v61 = vpop.f32.mrf.mxu1 }
0x1e0e   :  { %v1227_v62 = vadd.f32 %v1224_v61, %v659_v11 }
0x1e10   :  { %1736 = vtanh.f32 %v1227_v62  ;;  %v1608_v38 = vmul.f32 -1.442695, %v1227_v62 }
0x1e12   :  { %1738 = vpow2.f32 %v1608_v38 }
0x1e16   :  { %v1737_v36 = vpop.eup %1736 }
0x1e17   :  { %1250 = vrot.lane.b32.xlu2 %v1737_v36, %s1765_s17 }
0x1e18   :  { %v1739_v39 = vpop.eup %1738 }
0x1e19   :  { %v1231_v40 = vadd.f32 1.0, %v1739_v39 }
0x1e1b   :  { %1740 = vrcp.f32 %v1231_v40  ;;  %v1243_v58 = vand.u32 2147483648, %v1231_v40  ;;  %vm1237_vm7 = vweird.f32 %v1231_v40  ;;  %v1241_v57 = vand.u32 2147483647, %v1231_v40 }
0x1e1d   :  { %v1244_v37 = vor.u32 1.1754944e-38, %v1243_v58  ;;  %vm1242_vm12 = vcmp.eq.f32.partialorder %v1241_v57, 8.507059e+37 }
0x1e21   :  { %v1741_v63 = vpop.eup %1740 }
0x1e22   :  { %v1233_v44 = vmul.f32 %v1741_v63, %v1231_v40  ;;  %vm1238_vm11 = vweird.f32 %v1741_v63 }
0x1e23   :  { %vm1239_vm8 = vmor %vm1237_vm7, %vm1238_vm11  ;;  %vm1533_vm11 = vcmask 80896  }
0x1e24   :  { %v1234_v4 = vsub.f32 1.0, %v1233_v44 }
0x1e26   :  { %v1235_v6 = vmul.f32 %v1741_v63, %v1234_v4 }
0x1e28   :  { %v1236_v8 = vadd.f32 %v1741_v63, %v1235_v6 }
0x1e2a   :  { %v1240_v9 = vsel %vm1239_vm8, %v1741_v63, %v1236_v8 }
0x1e2b   :  { %v1245_v12 = vsel %vm1242_vm12, %v1244_v37, %v1240_v9 }
0x1e2c   :  { %v1248_v16 = vmul.f32 %v1245_v12, %v1199_v15 }
0x1e71   :  { %v1251_v10 = vpop.permute.xlu2 %1250 }
0x1e72   :  { %v1253_v14 = vmul.f32 %v1251_v10, %v1245_v12 }
0x1e74   :  { %1255 = vrot.lane.b32.xlu0 %v1253_v14, %s1765_s17  ;;  %v1403_v14 = vld [vmem:[%s2416_s8 + $0x18] sm:$0xff] }
0x1e75   :  { %1421 = vmatpush.msra.mxu0 %v1403_v14 }
0x1e77   :  { %1422 = vmatpush.msra.mxu0 %v1402_v56 }
0x1ee6   :  { %v1256_v17 = vpop.permute.xlu0 %1255 }
0x1ee7   :  { %v1258_v51 = vadd.f32 %v1256_v17, %v1248_v16  ;;  %v1401_v16 = vld [vmem:[%s2416_s8 + $0x8] sm:$0xff]  ;;  %v1400_v17 = vld [vmem:[%s2416_s8] sm:$0xff] }
0x1ee8   :  { %1423 = vmatpush.msra.mxu0 %v1401_v16 }
0x1ee9   :  { %1742 = vtanh.f32 %v1258_v51  ;;  %v1265_v50 = vsel %vm634_vm10, %v1258_v51, %v1199_v15  ;;  %v1399_v15 = vld [vmem:[%s2417_s7] sm:$0xf] }
0x1eea   :  { %1614 = vmatpush.msk.msra.mxu1 %vm1433_vm3, %v1399_v15  ;;  %1424 = vmatpush.msra.mxu0 %v1400_v17 }
0x1eef   :  { %v1743_v18 = vpop.eup %1742 }
0x1ef0   :  { %1261 = vrot.lane.b32.xlu1 %v1743_v18, %s1765_s17 }
0x1f62   :  { %v1262_v20 = vpop.permute.xlu1 %1261 }
0x1f63   :  { %v1264_v22 = vmul.f32 %v1262_v20, %v1245_v12 }
0x1f65   :  { %v1266_v29 = vsel %vm634_vm10, %v1264_v22, %v1200_v55  ;;  %v1398_v22 = vld [vmem:[%s2418_s2] sm:$0xff] }
0x1f66   :  { %1269 = vrot.lane.b32.xlu2 %v1266_v29, %s1767_s27 }
0x1fc0   :  { %v1270_v24 = vpop.permute.xlu2 %1269 }
0x1fc1   :  { %1609 = vmatmul.msk.f32.vlgmr.msrb.gmra.mxu2 %vm66_vm6, %v1270_v24 }
0x2044   :  { %v1290_v23 = vpop.f32.mrf.mxu2 }
0x2045   :  { %v1293_v42 = vadd.f32 %v1290_v23, %v760_v49  ;;  %v1464_v49 = vld [vmem:[%s2419_s10 + $0x8] sm:$0xff]  ;;  %v1463_v23 = vld [vmem:[%s2419_s10] sm:$0xff] }
0x2047   :  { %1744 = vtanh.f32 %v1293_v42  ;;  %v1610_v26 = vmul.f32 -1.442695, %v1293_v42  ;;  %v1498_v42 = vld [vmem:[%s2422_s12 + $0x18] sm:$0xff] }
0x2048   :  { %1518 = vmatpush.msra.mxu3 %v1498_v42 }
0x2049   :  { %1746 = vpow2.f32 %v1610_v26 }
0x204d   :  { %v1745_v25 = vpop.eup %1744 }
0x204e   :  { %1316 = vrot.lane.b32.xlu0 %v1745_v25, %s1765_s17  ;;  %v1497_v25 = vld [vmem:[%s2422_s12 + $0x10] sm:$0xff] }
0x204f   :  { %v1747_v7 = vpop.eup %1746  ;;  %1519 = vmatpush.msra.mxu3 %v1497_v25 }
0x2050   :  { %v1297_v13 = vadd.f32 1.0, %v1747_v7  ;;  %v1628_v7 = vld [vmem:[%s2420_s9] ss:$0 sm:$0xff] }
0x2052   :  { %1748 = vrcp.f32 %v1297_v13  ;;  %v1309_v31 = vand.u32 2147483648, %v1297_v13  ;;  %vm1303_vm9 = vweird.f32 %v1297_v13  ;;  %v1307_v30 = vand.u32 2147483647, %v1297_v13 }
0x2054   :  { %v1310_v21 = vor.u32 1.1754944e-38, %v1309_v31  ;;  %vm1308_vm14 = vcmp.eq.f32.partialorder %v1307_v30, 8.507059e+37  ;;  %v1528_v31 = vld [vmem:[%s2424_s14 + $0x8] sm:$0x3]  ;;  %v1629_v30 = vld [vmem:[%s2421_s11] ss:$0 sm:$0xff] }
0x2058   :  { %v1749_v27 = vpop.eup %1748 }
0x2059   :  { %v1299_v35 = vmul.f32 %v1749_v27, %v1297_v13  ;;  %vm1304_vm1 = vweird.f32 %v1749_v27 }
0x205a   :  { %vm1305_vm13 = vmor %vm1303_vm9, %vm1304_vm1 }
0x205b   :  { %v1300_v43 = vsub.f32 1.0, %v1299_v35 }
0x205d   :  { %v1301_v46 = vmul.f32 %v1749_v27, %v1300_v43 }
0x205f   :  { %v1302_v47 = vadd.f32 %v1749_v27, %v1301_v46  ;;  %v1496_v46 = vld [vmem:[%s2422_s12 + $0x8] sm:$0xff] }
0x2060   :  { %1520 = vmatpush.msra.mxu3 %v1496_v46 }
0x2061   :  { %v1306_v32 = vsel %vm1305_vm13, %v1749_v27, %v1302_v47  ;;  %v1495_v47 = vld [vmem:[%s2422_s12] sm:$0xff] }
0x2062   :  { %v1311_v33 = vsel %vm1308_vm14, %v1310_v21, %v1306_v32  ;;  %1521 = vmatpush.msra.mxu3 %v1495_v47 }
0x2063   :  { %v1314_v52 = vmul.f32 %v1311_v33, %v1265_v50 }
0x20c0   :  { %v1317_v28 = vpop.permute.xlu0 %1316 }
0x20c1   :  { %v1319_v34 = vmul.f32 %v1317_v28, %v1311_v33 }
0x20c3   :  { %1321 = vrot.lane.b32.xlu1 %v1319_v34, %s1765_s17  ;;  %v21_v34 = vstv %s2425_s15 }
0x20c4   :  { %22 = vst [vmem:[#allocation3] sm:$0x1] %v21_v34 }
0x2135   :  { %v1322_v0 = vpop.permute.xlu1 %1321 }
0x2136   :  { %v1324_v1 = vadd.f32 %v1322_v0, %v1314_v52 }
0x2138   :  { %1750 = vtanh.f32 %v1324_v1  ;;  %v1331_v57 = vsel %vm735_vm4, %v1324_v1, %v1265_v50  ;;  %v1630_v50 = vld [vmem:[%s2423_s13] ss:$0 sm:$0xff] }
0x213e   :  { %v1751_v5 = vpop.eup %1750 }
0x213f   :  { %1327 = vrot.lane.b32.xlu2 %v1751_v5, %s1765_s17  ;;  %v1631_v5 = vld [vmem:[#allocation3] ss:$0 sm:$0xff] }
0x2199   :  { %v1328_v2 = vpop.permute.xlu2 %1327 }
0x219a   :  { %v1330_v3 = vmul.f32 %v1328_v2, %v1311_v33  ;;  %v1527_v33 = vld [vmem:[%s2424_s14] sm:$0xff] }
0x219c   :  { %v1332_v53 = vsel %vm735_vm4, %v1330_v3, %v1266_v29  ;;  %vm1429_vm4 = vcmask 31744   ;;  %v1466_v29 = vld [vmem:[%s2419_s10 + $0x18] sm:$0xff] }
0x219d   :  { %1335 = vrot.lane.b32.xlu0 %v1332_v53, %s1767_s27  ;;  %1615 = vmatmul.msk.f32.vlgmr.msra.gmra.mxu1 %vm1429_vm4, %v1398_v22 }
0x219e   :  { %1486 = vmatpush.msra.mxu2 %v1466_v29 }
0x21a0   :  { %1487 = vmatpush.msra.mxu2 %v1465_v41 }
0x21a2   :  { %1488 = vmatpush.msra.mxu2 %v1464_v49 }
0x21a4   :  { %1489 = vmatpush.msra.mxu2 %v1463_v23 }
0x220f   :  { %v1336_v54 = vpop.permute.xlu0 %1335 }
0x2210   :  { %1611 = vmatmul.msk.f32.vlgmr.msrb.gmra.mxu3 %vm66_vm6, %v1336_v54 }
0x221a   :  { %v1454_v26 = vpop.f32.mrf.mxu1 }
0x2293   :  { %v1356_v45 = vpop.f32.mrf.mxu3 }
0x2294   :  { %v1359_v55 = vadd.f32 %v1356_v45, %v861_v19 }
0x2296   :  { %1752 = vtanh.f32 %v1359_v55  ;;  %v1612_v11 = vmul.f32 -1.442695, %v1359_v55 }
0x2298   :  { %1754 = vpow2.f32 %v1612_v11 }
0x229c   :  { %v1753_v60 = vpop.eup %1752 }
0x229d   :  { %1382 = vrot.lane.b32.xlu1 %v1753_v60, %s1765_s17 }
0x229e   :  { %v1755_v61 = vpop.eup %1754 }
0x229f   :  { %v1363_v62 = vadd.f32 1.0, %v1755_v61 }
0x22a1   :  { %1756 = vrcp.f32 %v1363_v62  ;;  %v1375_v44 = vand.u32 2147483648, %v1363_v62  ;;  %vm1369_vm2 = vweird.f32 %v1363_v62  ;;  %v1373_v48 = vand.u32 2147483647, %v1363_v62 }
0x22a3   :  { %v1376_v4 = vor.u32 1.1754944e-38, %v1375_v44  ;;  %vm1374_vm5 = vcmp.eq.f32.partialorder %v1373_v48, 8.507059e+37 }
0x22a7   :  { %v1757_v36 = vpop.eup %1756 }
0x22a8   :  { %v1365_v38 = vmul.f32 %v1757_v36, %v1363_v62  ;;  %vm1370_vm10 = vweird.f32 %v1757_v36 }
0x22a9   :  { %vm1371_vm0 = vmor %vm1369_vm2, %vm1370_vm10 }
0x22aa   :  { %v1366_v39 = vsub.f32 1.0, %v1365_v38 }
0x22ac   :  { %v1367_v40 = vmul.f32 %v1757_v36, %v1366_v39 }
0x22ae   :  { %v1368_v63 = vadd.f32 %v1757_v36, %v1367_v40 }
0x22b0   :  { %v1372_v59 = vsel %vm1371_vm0, %v1757_v36, %v1368_v63 }
0x22b1   :  { %v1377_v8 = vsel %vm1374_vm5, %v1376_v4, %v1372_v59 }
0x22b2   :  { %v1380_v9 = vmul.f32 %v1377_v8, %v1331_v57 }
0x230f   :  { %v1383_v6 = vpop.permute.xlu1 %1382 }
0x2310   :  { %v1385_v58 = vmul.f32 %v1383_v6, %v1377_v8 }
0x2312   :  { %1387 = vrot.lane.b32.xlu2 %v1385_v58, %s1765_s17 }
0x236c   :  { %v1388_v37 = vpop.permute.xlu2 %1387 }
0x236d   :  { %v1390_v10 = vadd.f32 %v1388_v37, %v1380_v9 }
0x236f   :  { %1758 = vtanh.f32 %v1390_v10 }
0x2375   :  { %v1759_v12 = vpop.eup %1758 }
0x2376   :  { %1393 = vrot.lane.b32.xlu0 %v1759_v12, %s1765_s17 }
0x23e8   :  { %v1394_v51 = vpop.permute.xlu0 %1393 }
0x23e9   :  { %v1396_v18 = vmul.f32 %v1394_v51, %v1377_v8 }
0x23eb   :  { %v1397_v20 = vsel %vm836_vm15, %v1396_v18, %v1332_v53  ;;  %vm1537_vm15 = vcmask 1041408  }
0x23ec   :  { %1405 = vrot.lane.b32.xlu1 %v1397_v20, %s1767_s27  ;;  %1618 = vmatpush.msk.msrb.mxu0 %vm1537_vm15, %v1528_v31 }
0x23ee   :  { %1556 = vmatpush.msrb.mxu0 %v1527_v33 }
0x245e   :  { %v1406_v24 = vpop.permute.xlu1 %1405 }
0x245f   :  { %1613 = vmatmul.msk.f32.vlgmr.msra.gmra.mxu0 %vm66_vm6, %v1406_v24 }
0x24dc   :  { %v1426_v13 = vpop.f32.mrf.mxu0 }
0x24dd   :  { %v1455_v27 = vadd.f32 %v1454_v26, %v1426_v13 }
0x24df   :  { %v1461_v35 = vadd.f32 %v1628_v7, %v1455_v27 }
0x24e1   :  { %v1462_v43 = vmax.f32 %v1461_v35, 0.0 }
0x24e3   :  { %1616 = vmatmul.msk.f32.vlgmr.msra.gmra.mxu2 %vm66_vm6, %v1462_v43 }
0x2566   :  { %v1491_v32 = vpop.f32.mrf.mxu2 }
0x2567   :  { %v1492_v21 = vadd.f32 %v1629_v30, %v1491_v32 }
0x2569   :  { %v1494_v28 = vmax.f32 %v1492_v21, 0.0 }
0x256b   :  { %1617 = vmatmul.msk.f32.vlgmr.msra.gmra.mxu3 %vm66_vm6, %v1494_v28  ;;  %vm1561_vm6 = vcmask 7168  }
0x25ee   :  { %v1523_v52 = vpop.f32.mrf.mxu3 }
0x25ef   :  { %v1524_v0 = vadd.f32 %v1630_v50, %v1523_v52 }
0x25f1   :  { %v1526_v1 = vmax.f32 %v1524_v0, 0.0 }
0x25f3   :  { %1619 = vmatmul.msk.f32.vlgmr.msrb.gmra.mxu0 %vm1533_vm11, %v1526_v1 }
0x2670   :  { %v1558_v2 = vpop.f32.mrf.mxu0 }
0x2671   :  { %v1559_v3 = vadd.f32 %v1631_v5, %v1558_v2 }
0x2673   :  { %1562 = vst.msk [vmem:[%s2426_s16] sm:$0xff] %vm1561_vm6, %v1559_v3 }

</bundles_post_ra>
